<compile_context>
chip_gen: v5e
topology: v5e:2x2
jax: 0.10.0
libtpu: 0.0.40
codegen_flags: <defaults>
</compile_context>

<pallas_src>
import functools

import jax
import jax.numpy as jnp
from jax.experimental import pallas as pl
from jax.experimental.pallas import tpu as pltpu

LANE = 128


def _round_up(x, m):
    return ((x + m - 1) // m) * m


def _choose_tile(dim_pad, target):
    """Largest multiple of 128 <= target that divides dim_pad (dim_pad is a mult of 128)."""
    t = min(target, dim_pad)
    while dim_pad % t:
        t -= LANE
    return t


# ----------------------------- Pallas kernels ------------------------------ #

def _sage_conv_kernel(a_ref, x_nb_ref, x_self_ref, rdeg_ref, wl_ref, wr_ref,
                      b_ref, *out_and_scratch, apply_relu, emit_bf16):
    """One (row_tile, k_tile) grid step of a SAGEConv layer.

    Inner loop (every k): accumulate the aggregation matmul A_tile @ X_tile (bf16 MXU).
    Epilogue (k == last): scale by 1/deg, apply W_l / W_r / bias / ReLU, store.
    """
    if emit_bf16:
        o32_ref, o16_ref, acc_ref = out_and_scratch
    else:
        (o32_ref, acc_ref), o16_ref = out_and_scratch, None

    k = pl.program_id(1)

    @pl.when(k == 0)
    def _init():
        acc_ref[...] = jnp.zeros_like(acc_ref)

    # MXU: bf16 adjacency counts x bf16 neighbor features, f32 accumulation.
    acc_ref[...] += jnp.dot(a_ref[...], x_nb_ref[...],
                            preferred_element_type=jnp.float32)

    @pl.when(k == pl.num_programs(1) - 1)
    def _epilogue():
        # mean aggregation: factored per-row reciprocal degree (kept in f32).
        agg = acc_ref[...] * rdeg_ref[...]                       # [TM, Fp]
        out = (
            jnp.dot(agg, wl_ref[...], preferred_element_type=jnp.float32)
            + jnp.dot(x_self_ref[...], wr_ref[...],
                      preferred_element_type=jnp.float32)
            + b_ref[...]
        )
        if apply_relu:
            out = jnp.maximum(out, 0.0)
        o32_ref[...] = out.astype(o32_ref.dtype)
        if emit_bf16:
            o16_ref[...] = out.astype(jnp.bfloat16)


def _pool_lin_kernel(p_ref, h_ref, w_ref, b_ref, o_ref, acc_ref):
    """global_mean_pool (as a pooling matmul reduced over node tiles) + Linear."""
    k = pl.program_id(0)

    @pl.when(k == 0)
    def _init():
        acc_ref[...] = jnp.zeros_like(acc_ref)

    acc_ref[...] += jnp.dot(p_ref[...], h_ref[...],
                            preferred_element_type=jnp.float32)

    @pl.when(k == pl.num_programs(0) - 1)
    def _epilogue():
        out = jnp.dot(acc_ref[...], w_ref[...],
                      preferred_element_type=jnp.float32) + b_ref[...]
        o_ref[...] = out.astype(o_ref.dtype)


# ------------------------------ Wrappers ----------------------------------- #

def sage_conv(a, x_nb16, x_self32, rdeg, w_l, w_r, b_l, *,
              apply_relu, emit_bf16, tm, tk):
    n_pad, f_pad = x_self32.shape
    h_pad = w_l.shape[1]
    grid = (n_pad // tm, n_pad // tk)

    out_spec = pl.BlockSpec((tm, h_pad), lambda i, k: (i, 0))
    if emit_bf16:
        out_shape = (jax.ShapeDtypeStruct((n_pad, h_pad), jnp.float32),
                     jax.ShapeDtypeStruct((n_pad, h_pad), jnp.bfloat16))
        out_specs = (out_spec, out_spec)
        out_bytes = n_pad * h_pad * (4 + 2)
    else:
        out_shape = jax.ShapeDtypeStruct((n_pad, h_pad), jnp.float32)
        out_specs = out_spec
        out_bytes = n_pad * h_pad * 4

    flops = 2 * n_pad * n_pad * f_pad + 4 * n_pad * f_pad * h_pad
    bytes_accessed = (a.size * 2                                 # bf16 adjacency counts
                      + (n_pad // tm) * n_pad * f_pad * 2        # bf16 neighbor X streams
                      + n_pad * f_pad * 4                        # f32 self X
                      + 2 * f_pad * h_pad * 4 + h_pad * 4        # resident weights / bias
                      + n_pad * 4                                # 1/deg
                      + out_bytes)

    kernel = functools.partial(_sage_conv_kernel,
                               apply_relu=apply_relu, emit_bf16=emit_bf16)
    return pl.pallas_call(
        kernel,
        out_shape=out_shape,
        grid=grid,
        in_specs=[
            pl.BlockSpec((tm, tk), lambda i, k: (i, k)),        # A count tile (bf16)
            pl.BlockSpec((tk, f_pad), lambda i, k: (k, 0)),     # X neighbor rows (bf16)
            pl.BlockSpec((tm, f_pad), lambda i, k: (i, 0)),     # X self rows (f32)
            pl.BlockSpec((tm, 1), lambda i, k: (i, 0)),         # 1/deg (f32)
            pl.BlockSpec((f_pad, h_pad), lambda i, k: (0, 0)),  # W_l (resident)
            pl.BlockSpec((f_pad, h_pad), lambda i, k: (0, 0)),  # W_r (resident)
            pl.BlockSpec((1, h_pad), lambda i, k: (0, 0)),      # bias (resident)
        ],
        out_specs=out_specs,
        scratch_shapes=[pltpu.VMEM((tm, f_pad), jnp.float32)],
        compiler_params=pltpu.CompilerParams(
            dimension_semantics=("parallel", "arbitrary")),
        cost_estimate=pl.CostEstimate(
            flops=flops, transcendentals=0, bytes_accessed=bytes_accessed),
    )(a, x_nb16, x_self32, rdeg, w_l, w_r, b_l)


def pool_and_classify(pool_mat, h, w, b, *, tk):
    g_pad, n_pad = pool_mat.shape
    h_pad = h.shape[1]
    c_pad = w.shape[1]
    grid = (n_pad // tk,)

    flops = 2 * g_pad * n_pad * h_pad + 2 * g_pad * h_pad * c_pad
    bytes_accessed = (pool_mat.size * 4 + h.size * 4 + w.size * 4
                      + b.size * 4 + g_pad * c_pad * 4)

    return pl.pallas_call(
        _pool_lin_kernel,
        out_shape=jax.ShapeDtypeStruct((g_pad, c_pad), jnp.float32),
        grid=grid,
        in_specs=[
            pl.BlockSpec((g_pad, tk), lambda k: (0, k)),        # pooling matrix
            pl.BlockSpec((tk, h_pad), lambda k: (k, 0)),        # node embeddings (f32)
            pl.BlockSpec((h_pad, c_pad), lambda k: (0, 0)),     # lin W (resident)
            pl.BlockSpec((1, c_pad), lambda k: (0, 0)),         # lin b (resident)
        ],
        out_specs=pl.BlockSpec((g_pad, c_pad), lambda k: (0, 0)),
        scratch_shapes=[pltpu.VMEM((g_pad, h_pad), jnp.float32)],
        compiler_params=pltpu.CompilerParams(
            dimension_semantics=("arbitrary",)),
        cost_estimate=pl.CostEstimate(
            flops=flops, transcendentals=0, bytes_accessed=bytes_accessed),
    )(pool_mat, h, w, b)


# --------------------------- Plain-JAX glue --------------------------------- #

def build_graph_operands(edge_index, num_nodes, n_pad):
    """Edge-count adjacency (bf16, exact for small counts) + f32 per-row 1/deg."""
    src, dst = edge_index[0], edge_index[1]
    adj = jnp.zeros((n_pad, n_pad), jnp.float32).at[dst, src].add(1.0)
    deg = adj.sum(axis=1, keepdims=True)
    rdeg = jnp.where(deg > 0.0, 1.0 / jnp.maximum(deg, 1.0), 0.0)  # zero-degree -> 0
    return adj.astype(jnp.bfloat16), rdeg.astype(jnp.float32)


def build_pool_mat(batch, num_nodes, g_pad, n_pad):
    """P[g, i] = 1/|{batch == g}| for real nodes of graph g, else 0."""
    batch_pad = jnp.zeros((n_pad,), jnp.int32).at[:num_nodes].set(batch)
    valid = (jnp.arange(n_pad) < num_nodes)
    onehot = ((batch_pad[None, :] == jnp.arange(g_pad)[:, None])
              & valid[None, :]).astype(jnp.float32)
    counts = onehot.sum(axis=1, keepdims=True)
    return onehot / jnp.maximum(counts, 1.0)


def init_params(key, num_node_features, hidden_channels, num_classes):
    f_pad = _round_up(num_node_features, LANE)
    h_pad = _round_up(hidden_channels, LANE)
    c_pad = _round_up(num_classes, LANE)
    ks = jax.random.split(key, 8)

    def lin(k, fan_in, fan_out, rows_pad, cols_pad):
        scale = 1.0 / jnp.sqrt(fan_in)
        w = jax.random.uniform(k, (fan_in, fan_out), jnp.float32, -scale, scale)
        return jnp.zeros((rows_pad, cols_pad), jnp.float32).at[:fan_in, :fan_out].set(w)

    p = {}
    dims = [(num_node_features, hidden_channels, f_pad, h_pad),
            (hidden_channels, hidden_channels, h_pad, h_pad),
            (hidden_channels, hidden_channels, h_pad, h_pad)]
    for layer, (fi, fo, rp, cp) in enumerate(dims, start=1):
        p[f"conv{layer}_wl"] = lin(ks[2 * (layer - 1)], fi, fo, rp, cp)
        p[f"conv{layer}_wr"] = lin(ks[2 * (layer - 1) + 1], fi, fo, rp, cp)
        p[f"conv{layer}_b"] = jnp.zeros((1, cp), jnp.float32)

    p["lin_w"] = lin(ks[6], hidden_channels, num_classes, h_pad, c_pad)
    bscale = 1.0 / jnp.sqrt(hidden_channels)
    lb = jax.random.uniform(ks[7], (1, num_classes), jnp.float32, -bscale, bscale)
    p["lin_b"] = jnp.zeros((1, c_pad), jnp.float32).at[:, :num_classes].set(lb)
    return p


# --------------------------- GraphSAGE forward ------------------------------ #

def _graphsage_forward(params, x, edge_index, batch, num_graphs):
    num_nodes, fin = x.shape
    f_pad = params["conv1_wl"].shape[0]
    n_pad = _round_up(num_nodes, LANE)
    g_pad = _round_up(max(num_graphs, 1), 8)
    tm = _choose_tile(n_pad, 256)   # output-row tile
    tk = _choose_tile(n_pad, 512)   # reduction (neighbor) tile

    x32 = jnp.zeros((n_pad, f_pad), jnp.float32).at[:num_nodes, :fin].set(x)
    x16 = x32.astype(jnp.bfloat16)
    a, rdeg = build_graph_operands(edge_index, num_nodes, n_pad)
    pool_mat = build_pool_mat(batch, num_nodes, g_pad, n_pad)

    h32, h16 = sage_conv(a, x16, x32, rdeg, params["conv1_wl"], params["conv1_wr"],
                         params["conv1_b"], apply_relu=True, emit_bf16=True,
                         tm=tm, tk=tk)
    h32, h16 = sage_conv(a, h16, h32, rdeg, params["conv2_wl"], params["conv2_wr"],
                         params["conv2_b"], apply_relu=True, emit_bf16=True,
                         tm=tm, tk=tk)
    h32 = sage_conv(a, h16, h32, rdeg, params["conv3_wl"], params["conv3_wr"],
                    params["conv3_b"], apply_relu=False, emit_bf16=False,
                    tm=tm, tk=tk)

    # TODO(synk): F.dropout(p=0.4, training=True) omitted; identity at inference.
    logits = pool_and_classify(pool_mat, h32, params["lin_w"], params["lin_b"], tk=tk)
    return logits


graphsage_forward = jax.jit(_graphsage_forward, static_argnums=(4,))


# ---------------------------------- Main ------------------------------------ #

if __name__ == "__main__":
    num_node_features = 8
    hidden_channels = 32
    num_classes = 4
    num_nodes = 32
    num_edges = 64
    num_graphs = 2

    key = jax.random.PRNGKey(0)
    k_x, k_src, k_dst, k_param = jax.random.split(key, 4)

    x = jax.random.normal(k_x, (num_nodes, num_node_features), jnp.float32)
    src = jax.random.randint(k_src, (num_edges,), 0, num_nodes, jnp.int32)
    dst = jax.random.randint(k_dst, (num_edges,), 0, num_nodes, jnp.int32)
    edge_index = jnp.stack([src, dst], axis=0)                              # [2, E]
    batch = (jnp.arange(num_nodes) >= num_nodes // 2).astype(jnp.int32)     # 2 graphs

    params = init_params(k_param, num_node_features, hidden_channels, num_classes)

    logits_padded = graphsage_forward(params, x, edge_index, batch, num_graphs)
    out = logits_padded[:num_graphs, :num_classes]
    out = jax.block_until_ready(out)
    assert out.shape == (num_graphs, num_classes)
    assert bool(jnp.all(jnp.isfinite(out)))
    print("KERNEL_OK")
</pallas_src>

<mosaic_0001>
module attributes {stable_mosaic.version = 11 : i64} {
  func.func @_sage_conv_kernel(%arg0: i32, %arg1: i32, %arg2: memref<128x128xbf16, #tpu.memory_space<vmem>>, %arg3: memref<128x128xbf16, #tpu.memory_space<vmem>>, %arg4: memref<128x128xf32, #tpu.memory_space<vmem>>, %arg5: memref<128x1xf32, #tpu.memory_space<vmem>>, %arg6: memref<128x128xf32, #tpu.memory_space<vmem>>, %arg7: memref<128x128xf32, #tpu.memory_space<vmem>>, %arg8: memref<1x128xf32, #tpu.memory_space<vmem>>, %arg9: memref<128x128xf32, #tpu.memory_space<vmem>>, %arg10: memref<128x128xbf16, #tpu.memory_space<vmem>>, %arg11: memref<128x128xf32, #tpu.memory_space<vmem>>) attributes {dimension_semantics = [#tpu.dimension_semantics<parallel>, #tpu.dimension_semantics<arbitrary>], iteration_bounds = array<i64: 1, 1>, scalar_prefetch = 0 : i64, scratch_operands = 1 : i64, tpu.core_type = #tpu.core_type<tc>, window_params = [{transform_indices = @transform_0, window_bounds = array<i64: 128, 128>}, {transform_indices = @transform_1, window_bounds = array<i64: 128, 128>}, {transform_indices = @transform_2, window_bounds = array<i64: 128, 128>}, {transform_indices = @transform_3, window_bounds = array<i64: 128, 1>}, {pipeline_mode = #tpu.pipeline_mode<synchronous>, transform_indices = @transform_4, window_bounds = array<i64: 128, 128>}, {pipeline_mode = #tpu.pipeline_mode<synchronous>, transform_indices = @transform_5, window_bounds = array<i64: 128, 128>}, {pipeline_mode = #tpu.pipeline_mode<synchronous>, transform_indices = @transform_6, window_bounds = array<i64: 1, 128>}, {transform_indices = @transform_7, window_bounds = array<i64: 128, 128>}, {transform_indices = @transform_8, window_bounds = array<i64: 128, 128>}]} {
    %c0_i32 = arith.constant 0 : i32
    %0 = arith.cmpi eq, %arg1, %c0_i32 : i32
    %1 = arith.extui %0 : i1 to i32
    %c0_i32_0 = arith.constant 0 : i32
    %2 = arith.cmpi ne, %1, %c0_i32_0 : i32
    scf.if %2 {
      %cst_10 = arith.constant 0.000000e+00 : f32
      %12 = vector.broadcast %cst_10 : f32 to vector<128x128xf32>
      %c0_11 = arith.constant 0 : index
      %c0_12 = arith.constant 0 : index
      %13 = vector.load %arg11[%c0_11, %c0_12] : memref<128x128xf32, #tpu.memory_space<vmem>>, vector<128x128xf32>
      tpu.vector_store %arg11[%c0_11, %c0_12], %12 {strides = array<i32>} : memref<128x128xf32, #tpu.memory_space<vmem>>, vector<128x128xf32>,
    } else {
    }
    %c0 = arith.constant 0 : index
    %c0_1 = arith.constant 0 : index
    %3 = vector.load %arg11[%c0, %c0_1] : memref<128x128xf32, #tpu.memory_space<vmem>>, vector<128x128xf32>
    %c0_2 = arith.constant 0 : index
    %c0_3 = arith.constant 0 : index
    %4 = vector.load %arg2[%c0_2, %c0_3] : memref<128x128xbf16, #tpu.memory_space<vmem>>, vector<128x128xbf16>
    %c0_4 = arith.constant 0 : index
    %c0_5 = arith.constant 0 : index
    %5 = vector.load %arg3[%c0_4, %c0_5] : memref<128x128xbf16, #tpu.memory_space<vmem>>, vector<128x128xbf16>
    %cst = arith.constant dense<0.000000e+00> : vector<128x128xf32>
    %6 = tpu.matmul %4, %5, %cst {dimension_numbers = #tpu.dot_dimension_numbers<[1], [0], [0], [1], [0, 0, 1, 1], [], []>} : vector<128x128xbf16>, vector<128x128xbf16>, vector<128x128xf32> -> vector<128x128xf32>
    %7 = arith.addf %3, %6 : vector<128x128xf32>
    %c0_6 = arith.constant 0 : index
    %c0_7 = arith.constant 0 : index
    %8 = vector.load %arg11[%c0_6, %c0_7] : memref<128x128xf32, #tpu.memory_space<vmem>>, vector<128x128xf32>
    tpu.vector_store %arg11[%c0_6, %c0_7], %7 {strides = array<i32>} : memref<128x128xf32, #tpu.memory_space<vmem>>, vector<128x128xf32>,
    %c0_i32_8 = arith.constant 0 : i32
    %9 = arith.cmpi eq, %arg1, %c0_i32_8 : i32
    %10 = arith.extui %9 : i1 to i32
    %c0_i32_9 = arith.constant 0 : i32
    %11 = arith.cmpi ne, %10, %c0_i32_9 : i32
    scf.if %11 {
      %c0_10 = arith.constant 0 : index
      %c0_11 = arith.constant 0 : index
      %12 = vector.load %arg11[%c0_10, %c0_11] : memref<128x128xf32, #tpu.memory_space<vmem>>, vector<128x128xf32>
      %c0_12 = arith.constant 0 : index
      %c0_13 = arith.constant 0 : index
      %13 = vector.load %arg5[%c0_12, %c0_13] : memref<128x1xf32, #tpu.memory_space<vmem>>, vector<128x1xf32>
      %14 = vector.broadcast %13 : vector<128x1xf32> to vector<128x128xf32>
      %15 = arith.mulf %12, %14 : vector<128x128xf32>
      %c0_14 = arith.constant 0 : index
      %c0_15 = arith.constant 0 : index
      %16 = vector.load %arg6[%c0_14, %c0_15] : memref<128x128xf32, #tpu.memory_space<vmem>>, vector<128x128xf32>
      %cst_16 = arith.constant dense<0.000000e+00> : vector<128x128xf32>
      %17 = tpu.matmul %15, %16, %cst_16 {dimension_numbers = #tpu.dot_dimension_numbers<[1], [0], [0], [1], [0, 0, 1, 1], [], []>} : vector<128x128xf32>, vector<128x128xf32>, vector<128x128xf32> -> vector<128x128xf32>
      %c0_17 = arith.constant 0 : index
      %c0_18 = arith.constant 0 : index
      %18 = vector.load %arg4[%c0_17, %c0_18] : memref<128x128xf32, #tpu.memory_space<vmem>>, vector<128x128xf32>
      %c0_19 = arith.constant 0 : index
      %c0_20 = arith.constant 0 : index
      %19 = vector.load %arg7[%c0_19, %c0_20] : memref<128x128xf32, #tpu.memory_space<vmem>>, vector<128x128xf32>
      %cst_21 = arith.constant dense<0.000000e+00> : vector<128x128xf32>
      %20 = tpu.matmul %18, %19, %cst_21 {dimension_numbers = #tpu.dot_dimension_numbers<[1], [0], [0], [1], [0, 0, 1, 1], [], []>} : vector<128x128xf32>, vector<128x128xf32>, vector<128x128xf32> -> vector<128x128xf32>
      %21 = arith.addf %17, %20 : vector<128x128xf32>
      %c0_22 = arith.constant 0 : index
      %c0_23 = arith.constant 0 : index
      %22 = vector.load %arg8[%c0_22, %c0_23] : memref<1x128xf32, #tpu.memory_space<vmem>>, vector<1x128xf32>
      %23 = vector.broadcast %22 : vector<1x128xf32> to vector<128x128xf32>
      %24 = arith.addf %21, %23 : vector<128x128xf32>
      %cst_24 = arith.constant 0.000000e+00 : f32
      %25 = vector.broadcast %cst_24 : f32 to vector<128x128xf32>
      %26 = arith.maximumf %24, %25 : vector<128x128xf32>
      %c0_25 = arith.constant 0 : index
      %c0_26 = arith.constant 0 : index
      %27 = vector.load %arg9[%c0_25, %c0_26] : memref<128x128xf32, #tpu.memory_space<vmem>>, vector<128x128xf32>
      tpu.vector_store %arg9[%c0_25, %c0_26], %26 {strides = array<i32>} : memref<128x128xf32, #tpu.memory_space<vmem>>, vector<128x128xf32>,
      %28 = arith.truncf %26 : vector<128x128xf32> to vector<128x128xbf16>
      %c0_27 = arith.constant 0 : index
      %c0_28 = arith.constant 0 : index
      %29 = vector.load %arg10[%c0_27, %c0_28] : memref<128x128xbf16, #tpu.memory_space<vmem>>, vector<128x128xbf16>
      tpu.vector_store %arg10[%c0_27, %c0_28], %28 {strides = array<i32>} : memref<128x128xbf16, #tpu.memory_space<vmem>>, vector<128x128xbf16>,
    } else {
    }
    return
  }
  func.func @transform_0(%arg0: i32, %arg1: i32) -> (i32, i32) {
    %c0_i32 = arith.constant 0 : i32
    return %arg0, %arg1 : i32, i32
  }
  func.func @transform_1(%arg0: i32, %arg1: i32) -> (i32, i32) {
    %c0_i32 = arith.constant 0 : i32
    %c0_i32_0 = arith.constant 0 : i32
    return %arg1, %c0_i32 : i32, i32
  }
  func.func @transform_2(%arg0: i32, %arg1: i32) -> (i32, i32) {
    %c0_i32 = arith.constant 0 : i32
    %c0_i32_0 = arith.constant 0 : i32
    return %arg0, %c0_i32 : i32, i32
  }
  func.func @transform_3(%arg0: i32, %arg1: i32) -> (i32, i32) {
    %c0_i32 = arith.constant 0 : i32
    %c0_i32_0 = arith.constant 0 : i32
    return %arg0, %c0_i32 : i32, i32
  }
  func.func @transform_4(%arg0: i32, %arg1: i32) -> (i32, i32) {
    %c0_i32 = arith.constant 0 : i32
    %c0_i32_0 = arith.constant 0 : i32
    %c0_i32_1 = arith.constant 0 : i32
    return %c0_i32, %c0_i32_0 : i32, i32
  }
  func.func @transform_5(%arg0: i32, %arg1: i32) -> (i32, i32) {
    %c0_i32 = arith.constant 0 : i32
    %c0_i32_0 = arith.constant 0 : i32
    %c0_i32_1 = arith.constant 0 : i32
    return %c0_i32, %c0_i32_0 : i32, i32
  }
  func.func @transform_6(%arg0: i32, %arg1: i32) -> (i32, i32) {
    %c0_i32 = arith.constant 0 : i32
    %c0_i32_0 = arith.constant 0 : i32
    %c0_i32_1 = arith.constant 0 : i32
    return %c0_i32, %c0_i32_0 : i32, i32
  }
  func.func @transform_7(%arg0: i32, %arg1: i32) -> (i32, i32) {
    %c0_i32 = arith.constant 0 : i32
    %c0_i32_0 = arith.constant 0 : i32
    return %arg0, %c0_i32 : i32, i32
  }
  func.func @transform_8(%arg0: i32, %arg1: i32) -> (i32, i32) {
    %c0_i32 = arith.constant 0 : i32
    %c0_i32_0 = arith.constant 0 : i32
    return %arg0, %c0_i32 : i32, i32
  }
}

module attributes {stable_mosaic.version = 11 : i64} {
  func.func @_sage_conv_kernel(%arg0: i32, %arg1: i32, %arg2: memref<128x128xbf16, #tpu.memory_space<vmem>>, %arg3: memref<128x128xbf16, #tpu.memory_space<vmem>>, %arg4: memref<128x128xf32, #tpu.memory_space<vmem>>, %arg5: memref<128x1xf32, #tpu.memory_space<vmem>>, %arg6: memref<128x128xf32, #tpu.memory_space<vmem>>, %arg7: memref<128x128xf32, #tpu.memory_space<vmem>>, %arg8: memref<1x128xf32, #tpu.memory_space<vmem>>, %arg9: memref<128x128xf32, #tpu.memory_space<vmem>>, %arg10: memref<128x128xf32, #tpu.memory_space<vmem>>) attributes {dimension_semantics = [#tpu.dimension_semantics<parallel>, #tpu.dimension_semantics<arbitrary>], iteration_bounds = array<i64: 1, 1>, scalar_prefetch = 0 : i64, scratch_operands = 1 : i64, tpu.core_type = #tpu.core_type<tc>, window_params = [{transform_indices = @transform_0, window_bounds = array<i64: 128, 128>}, {transform_indices = @transform_1, window_bounds = array<i64: 128, 128>}, {transform_indices = @transform_2, window_bounds = array<i64: 128, 128>}, {transform_indices = @transform_3, window_bounds = array<i64: 128, 1>}, {pipeline_mode = #tpu.pipeline_mode<synchronous>, transform_indices = @transform_4, window_bounds = array<i64: 128, 128>}, {pipeline_mode = #tpu.pipeline_mode<synchronous>, transform_indices = @transform_5, window_bounds = array<i64: 128, 128>}, {pipeline_mode = #tpu.pipeline_mode<synchronous>, transform_indices = @transform_6, window_bounds = array<i64: 1, 128>}, {transform_indices = @transform_7, window_bounds = array<i64: 128, 128>}]} {
    %c0_i32 = arith.constant 0 : i32
    %0 = arith.cmpi eq, %arg1, %c0_i32 : i32
    %1 = arith.extui %0 : i1 to i32
    %c0_i32_0 = arith.constant 0 : i32
    %2 = arith.cmpi ne, %1, %c0_i32_0 : i32
    scf.if %2 {
      %cst_10 = arith.constant 0.000000e+00 : f32
      %12 = vector.broadcast %cst_10 : f32 to vector<128x128xf32>
      %c0_11 = arith.constant 0 : index
      %c0_12 = arith.constant 0 : index
      %13 = vector.load %arg10[%c0_11, %c0_12] : memref<128x128xf32, #tpu.memory_space<vmem>>, vector<128x128xf32>
      tpu.vector_store %arg10[%c0_11, %c0_12], %12 {strides = array<i32>} : memref<128x128xf32, #tpu.memory_space<vmem>>, vector<128x128xf32>,
    } else {
    }
    %c0 = arith.constant 0 : index
    %c0_1 = arith.constant 0 : index
    %3 = vector.load %arg10[%c0, %c0_1] : memref<128x128xf32, #tpu.memory_space<vmem>>, vector<128x128xf32>
    %c0_2 = arith.constant 0 : index
    %c0_3 = arith.constant 0 : index
    %4 = vector.load %arg2[%c0_2, %c0_3] : memref<128x128xbf16, #tpu.memory_space<vmem>>, vector<128x128xbf16>
    %c0_4 = arith.constant 0 : index
    %c0_5 = arith.constant 0 : index
    %5 = vector.load %arg3[%c0_4, %c0_5] : memref<128x128xbf16, #tpu.memory_space<vmem>>, vector<128x128xbf16>
    %cst = arith.constant dense<0.000000e+00> : vector<128x128xf32>
    %6 = tpu.matmul %4, %5, %cst {dimension_numbers = #tpu.dot_dimension_numbers<[1], [0], [0], [1], [0, 0, 1, 1], [], []>} : vector<128x128xbf16>, vector<128x128xbf16>, vector<128x128xf32> -> vector<128x128xf32>
    %7 = arith.addf %3, %6 : vector<128x128xf32>
    %c0_6 = arith.constant 0 : index
    %c0_7 = arith.constant 0 : index
    %8 = vector.load %arg10[%c0_6, %c0_7] : memref<128x128xf32, #tpu.memory_space<vmem>>, vector<128x128xf32>
    tpu.vector_store %arg10[%c0_6, %c0_7], %7 {strides = array<i32>} : memref<128x128xf32, #tpu.memory_space<vmem>>, vector<128x128xf32>,
    %c0_i32_8 = arith.constant 0 : i32
    %9 = arith.cmpi eq, %arg1, %c0_i32_8 : i32
    %10 = arith.extui %9 : i1 to i32
    %c0_i32_9 = arith.constant 0 : i32
    %11 = arith.cmpi ne, %10, %c0_i32_9 : i32
    scf.if %11 {
      %c0_10 = arith.constant 0 : index
      %c0_11 = arith.constant 0 : index
      %12 = vector.load %arg10[%c0_10, %c0_11] : memref<128x128xf32, #tpu.memory_space<vmem>>, vector<128x128xf32>
      %c0_12 = arith.constant 0 : index
      %c0_13 = arith.constant 0 : index
      %13 = vector.load %arg5[%c0_12, %c0_13] : memref<128x1xf32, #tpu.memory_space<vmem>>, vector<128x1xf32>
      %14 = vector.broadcast %13 : vector<128x1xf32> to vector<128x128xf32>
      %15 = arith.mulf %12, %14 : vector<128x128xf32>
      %c0_14 = arith.constant 0 : index
      %c0_15 = arith.constant 0 : index
      %16 = vector.load %arg6[%c0_14, %c0_15] : memref<128x128xf32, #tpu.memory_space<vmem>>, vector<128x128xf32>
      %cst_16 = arith.constant dense<0.000000e+00> : vector<128x128xf32>
      %17 = tpu.matmul %15, %16, %cst_16 {dimension_numbers = #tpu.dot_dimension_numbers<[1], [0], [0], [1], [0, 0, 1, 1], [], []>} : vector<128x128xf32>, vector<128x128xf32>, vector<128x128xf32> -> vector<128x128xf32>
      %c0_17 = arith.constant 0 : index
      %c0_18 = arith.constant 0 : index
      %18 = vector.load %arg4[%c0_17, %c0_18] : memref<128x128xf32, #tpu.memory_space<vmem>>, vector<128x128xf32>
      %c0_19 = arith.constant 0 : index
      %c0_20 = arith.constant 0 : index
      %19 = vector.load %arg7[%c0_19, %c0_20] : memref<128x128xf32, #tpu.memory_space<vmem>>, vector<128x128xf32>
      %cst_21 = arith.constant dense<0.000000e+00> : vector<128x128xf32>
      %20 = tpu.matmul %18, %19, %cst_21 {dimension_numbers = #tpu.dot_dimension_numbers<[1], [0], [0], [1], [0, 0, 1, 1], [], []>} : vector<128x128xf32>, vector<128x128xf32>, vector<128x128xf32> -> vector<128x128xf32>
      %21 = arith.addf %17, %20 : vector<128x128xf32>
      %c0_22 = arith.constant 0 : index
      %c0_23 = arith.constant 0 : index
      %22 = vector.load %arg8[%c0_22, %c0_23] : memref<1x128xf32, #tpu.memory_space<vmem>>, vector<1x128xf32>
      %23 = vector.broadcast %22 : vector<1x128xf32> to vector<128x128xf32>
      %24 = arith.addf %21, %23 : vector<128x128xf32>
      %c0_24 = arith.constant 0 : index
      %c0_25 = arith.constant 0 : index
      %25 = vector.load %arg9[%c0_24, %c0_25] : memref<128x128xf32, #tpu.memory_space<vmem>>, vector<128x128xf32>
      tpu.vector_store %arg9[%c0_24, %c0_25], %24 {strides = array<i32>} : memref<128x128xf32, #tpu.memory_space<vmem>>, vector<128x128xf32>,
    } else {
    }
    return
  }
  func.func @transform_0(%arg0: i32, %arg1: i32) -> (i32, i32) {
    %c0_i32 = arith.constant 0 : i32
    return %arg0, %arg1 : i32, i32
  }
  func.func @transform_1(%arg0: i32, %arg1: i32) -> (i32, i32) {
    %c0_i32 = arith.constant 0 : i32
    %c0_i32_0 = arith.constant 0 : i32
    return %arg1, %c0_i32 : i32, i32
  }
  func.func @transform_2(%arg0: i32, %arg1: i32) -> (i32, i32) {
    %c0_i32 = arith.constant 0 : i32
    %c0_i32_0 = arith.constant 0 : i32
    return %arg0, %c0_i32 : i32, i32
  }
  func.func @transform_3(%arg0: i32, %arg1: i32) -> (i32, i32) {
    %c0_i32 = arith.constant 0 : i32
    %c0_i32_0 = arith.constant 0 : i32
    return %arg0, %c0_i32 : i32, i32
  }
  func.func @transform_4(%arg0: i32, %arg1: i32) -> (i32, i32) {
    %c0_i32 = arith.constant 0 : i32
    %c0_i32_0 = arith.constant 0 : i32
    %c0_i32_1 = arith.constant 0 : i32
    return %c0_i32, %c0_i32_0 : i32, i32
  }
  func.func @transform_5(%arg0: i32, %arg1: i32) -> (i32, i32) {
    %c0_i32 = arith.constant 0 : i32
    %c0_i32_0 = arith.constant 0 : i32
    %c0_i32_1 = arith.constant 0 : i32
    return %c0_i32, %c0_i32_0 : i32, i32
  }
  func.func @transform_6(%arg0: i32, %arg1: i32) -> (i32, i32) {
    %c0_i32 = arith.constant 0 : i32
    %c0_i32_0 = arith.constant 0 : i32
    %c0_i32_1 = arith.constant 0 : i32
    return %c0_i32, %c0_i32_0 : i32, i32
  }
  func.func @transform_7(%arg0: i32, %arg1: i32) -> (i32, i32) {
    %c0_i32 = arith.constant 0 : i32
    %c0_i32_0 = arith.constant 0 : i32
    return %arg0, %c0_i32 : i32, i32
  }
}

module attributes {stable_mosaic.version = 11 : i64} {
  func.func @_pool_lin_kernel(%arg0: i32, %arg1: memref<8x128xf32, #tpu.memory_space<vmem>>, %arg2: memref<128x128xf32, #tpu.memory_space<vmem>>, %arg3: memref<128x128xf32, #tpu.memory_space<vmem>>, %arg4: memref<1x128xf32, #tpu.memory_space<vmem>>, %arg5: memref<8x128xf32, #tpu.memory_space<vmem>>, %arg6: memref<8x128xf32, #tpu.memory_space<vmem>>) attributes {dimension_semantics = [#tpu.dimension_semantics<arbitrary>], iteration_bounds = array<i64: 1>, scalar_prefetch = 0 : i64, scratch_operands = 1 : i64, tpu.core_type = #tpu.core_type<tc>, window_params = [{transform_indices = @transform_0, window_bounds = array<i64: 8, 128>}, {transform_indices = @transform_1, window_bounds = array<i64: 128, 128>}, {pipeline_mode = #tpu.pipeline_mode<synchronous>, transform_indices = @transform_2, window_bounds = array<i64: 128, 128>}, {pipeline_mode = #tpu.pipeline_mode<synchronous>, transform_indices = @transform_3, window_bounds = array<i64: 1, 128>}, {pipeline_mode = #tpu.pipeline_mode<synchronous>, transform_indices = @transform_4, window_bounds = array<i64: 8, 128>}]} {
    %c0_i32 = arith.constant 0 : i32
    %0 = arith.cmpi eq, %arg0, %c0_i32 : i32
    %1 = arith.extui %0 : i1 to i32
    %c0_i32_0 = arith.constant 0 : i32
    %2 = arith.cmpi ne, %1, %c0_i32_0 : i32
    scf.if %2 {
      %cst_10 = arith.constant 0.000000e+00 : f32
      %12 = vector.broadcast %cst_10 : f32 to vector<8x128xf32>
      %c0_11 = arith.constant 0 : index
      %c0_12 = arith.constant 0 : index
      %13 = vector.load %arg6[%c0_11, %c0_12] : memref<8x128xf32, #tpu.memory_space<vmem>>, vector<8x128xf32>
      tpu.vector_store %arg6[%c0_11, %c0_12], %12 {strides = array<i32>} : memref<8x128xf32, #tpu.memory_space<vmem>>, vector<8x128xf32>,
    } else {
    }
    %c0 = arith.constant 0 : index
    %c0_1 = arith.constant 0 : index
    %3 = vector.load %arg6[%c0, %c0_1] : memref<8x128xf32, #tpu.memory_space<vmem>>, vector<8x128xf32>
    %c0_2 = arith.constant 0 : index
    %c0_3 = arith.constant 0 : index
    %4 = vector.load %arg1[%c0_2, %c0_3] : memref<8x128xf32, #tpu.memory_space<vmem>>, vector<8x128xf32>
    %c0_4 = arith.constant 0 : index
    %c0_5 = arith.constant 0 : index
    %5 = vector.load %arg2[%c0_4, %c0_5] : memref<128x128xf32, #tpu.memory_space<vmem>>, vector<128x128xf32>
    %cst = arith.constant dense<0.000000e+00> : vector<8x128xf32>
    %6 = tpu.matmul %4, %5, %cst {dimension_numbers = #tpu.dot_dimension_numbers<[1], [0], [0], [1], [0, 0, 1, 1], [], []>} : vector<8x128xf32>, vector<128x128xf32>, vector<8x128xf32> -> vector<8x128xf32>
    %7 = arith.addf %3, %6 : vector<8x128xf32>
    %c0_6 = arith.constant 0 : index
    %c0_7 = arith.constant 0 : index
    %8 = vector.load %arg6[%c0_6, %c0_7] : memref<8x128xf32, #tpu.memory_space<vmem>>, vector<8x128xf32>
    tpu.vector_store %arg6[%c0_6, %c0_7], %7 {strides = array<i32>} : memref<8x128xf32, #tpu.memory_space<vmem>>, vector<8x128xf32>,
    %c0_i32_8 = arith.constant 0 : i32
    %9 = arith.cmpi eq, %arg0, %c0_i32_8 : i32
    %10 = arith.extui %9 : i1 to i32
    %c0_i32_9 = arith.constant 0 : i32
    %11 = arith.cmpi ne, %10, %c0_i32_9 : i32
    scf.if %11 {
      %c0_10 = arith.constant 0 : index
      %c0_11 = arith.constant 0 : index
      %12 = vector.load %arg6[%c0_10, %c0_11] : memref<8x128xf32, #tpu.memory_space<vmem>>, vector<8x128xf32>
      %c0_12 = arith.constant 0 : index
      %c0_13 = arith.constant 0 : index
      %13 = vector.load %arg3[%c0_12, %c0_13] : memref<128x128xf32, #tpu.memory_space<vmem>>, vector<128x128xf32>
      %cst_14 = arith.constant dense<0.000000e+00> : vector<8x128xf32>
      %14 = tpu.matmul %12, %13, %cst_14 {dimension_numbers = #tpu.dot_dimension_numbers<[1], [0], [0], [1], [0, 0, 1, 1], [], []>} : vector<8x128xf32>, vector<128x128xf32>, vector<8x128xf32> -> vector<8x128xf32>
      %c0_15 = arith.constant 0 : index
      %c0_16 = arith.constant 0 : index
      %15 = vector.load %arg4[%c0_15, %c0_16] : memref<1x128xf32, #tpu.memory_space<vmem>>, vector<1x128xf32>
      %16 = vector.broadcast %15 : vector<1x128xf32> to vector<8x128xf32>
      %17 = arith.addf %14, %16 : vector<8x128xf32>
      %c0_17 = arith.constant 0 : index
      %c0_18 = arith.constant 0 : index
      %18 = vector.load %arg5[%c0_17, %c0_18] : memref<8x128xf32, #tpu.memory_space<vmem>>, vector<8x128xf32>
      tpu.vector_store %arg5[%c0_17, %c0_18], %17 {strides = array<i32>} : memref<8x128xf32, #tpu.memory_space<vmem>>, vector<8x128xf32>,
    } else {
    }
    return
  }
  func.func @transform_0(%arg0: i32) -> (i32, i32) {
    %c0_i32 = arith.constant 0 : i32
    %c0_i32_0 = arith.constant 0 : i32
    return %c0_i32, %arg0 : i32, i32
  }
  func.func @transform_1(%arg0: i32) -> (i32, i32) {
    %c0_i32 = arith.constant 0 : i32
    %c0_i32_0 = arith.constant 0 : i32
    return %arg0, %c0_i32 : i32, i32
  }
  func.func @transform_2(%arg0: i32) -> (i32, i32) {
    %c0_i32 = arith.constant 0 : i32
    %c0_i32_0 = arith.constant 0 : i32
    %c0_i32_1 = arith.constant 0 : i32
    return %c0_i32, %c0_i32_0 : i32, i32
  }
  func.func @transform_3(%arg0: i32) -> (i32, i32) {
    %c0_i32 = arith.constant 0 : i32
    %c0_i32_0 = arith.constant 0 : i32
    %c0_i32_1 = arith.constant 0 : i32
    return %c0_i32, %c0_i32_0 : i32, i32
  }
  func.func @transform_4(%arg0: i32) -> (i32, i32) {
    %c0_i32 = arith.constant 0 : i32
    %c0_i32_0 = arith.constant 0 : i32
    %c0_i32_1 = arith.constant 0 : i32
    return %c0_i32, %c0_i32_0 : i32, i32
  }
}

</mosaic_0001>

<bundles_post_ra>
// kernel: _graphsage_forward.7
= control target key start
LH: loop header
LB: loop body
LE: loop exit
PB: predicated region body
PF: predicated region fallthrough
CT: control target
= control target key end

     0   :  { %s283_s0 = inlined_call_operand.vmem [shape: f32[8,128], index: 0, kind: input, shape index: {}]   ;;  %s284_s1 = inlined_call_operand.vmem [shape: f32[128,128], index: 1, kind: input, shape index: {}]   ;;  %s285_s2 = inlined_call_operand.vmem [shape: f32[128,128], index: 2, kind: input, shape index: {}]   ;;  %s286_s3 = inlined_call_operand.vmem [shape: f32[1,128], index: 3, kind: input, shape index: {}]   ;;  %s287_s4 = inlined_call_operand.hbm [shape: f32[8,128], index: 4, kind: output, shape index: {}]  }
   0x1   :  { %v40_v0 = vld [vmem:[%s284_s1 + $0x78] sm:$0xff]  ;;  %v39_v1 = vld [vmem:[%s284_s1 + $0x70] sm:$0xff]  ;;  %v38_v2 = vld [vmem:[%s284_s1 + $0x68] sm:$0xff] }
   0x2   :  { %41 = vmatpush.msra.mxu0 %v40_v0  ;;  %v37_v3 = vld [vmem:[%s284_s1 + $0x60] sm:$0xff]  ;;  %v82_v4 = vld [vmem:[%s285_s2 + $0x78] sm:$0xff]  ;;  %v81_v6 = vld [vmem:[%s285_s2 + $0x70] sm:$0xff] }
   0x3   :  { %v36_v5 = vld [vmem:[%s284_s1 + $0x58] sm:$0xff]  ;;  %87 = vmatpush.msra.mxu1 %v82_v4  ;;  %v80_v7 = vld [vmem:[%s285_s2 + $0x68] sm:$0xff]  ;;  %v35_v8 = vld [vmem:[%s284_s1 + $0x50] sm:$0xff] }
   0x4   :  { %42 = vmatpush.msra.mxu0 %v39_v1  ;;  %v79_v9 = vld [vmem:[%s285_s2 + $0x60] sm:$0xff]  ;;  %v34_v10 = vld [vmem:[%s284_s1 + $0x48] sm:$0xff]  ;;  %v78_v11 = vld [vmem:[%s285_s2 + $0x58] sm:$0xff] }
   0x5   :  { %88 = vmatpush.msra.mxu1 %v81_v6 }
   0x6   :  { %43 = vmatpush.msra.mxu0 %v38_v2 }
   0x7   :  { %89 = vmatpush.msra.mxu1 %v80_v7 }
   0x8   :  { %44 = vmatpush.msra.mxu0 %v37_v3 }
   0xa   :  { %45 = vmatpush.msra.mxu0 %v36_v5 }
   0xc   :  { %46 = vmatpush.msra.mxu0 %v35_v8 }
   0xd   :  { %9 = vsyncpa [#allocation4], 0  ;;  %v33_v12 = vld [vmem:[%s284_s1 + $0x40] sm:$0xff]  ;;  %90 = vmatpush.msra.mxu1 %v79_v9  ;;  %v77_v13 = vld [vmem:[%s285_s2 + $0x50] sm:$0xff]  ;;  %s152_s29 = smov [#allocation3]   ;;  %s115_s7 = sshll.u32 %s287_s4, 4  ;;  %s116_s7 = int_to_ptr.hbm [resolvable:$true] %s115_s7 }
   0xe   :  { %47 = vmatpush.msra.mxu0 %v34_v10  ;;  %v32_v14 = vld [vmem:[%s284_s1 + $0x38] sm:$0xff]  ;;  %v76_v15 = vld [vmem:[%s285_s2 + $0x48] sm:$0xff]  ;;  %v31_v16 = vld [vmem:[%s284_s1 + $0x30] sm:$0xff]  ;;  %s113_s30 = sshll.u32 %s152_s29, 4  ;;  %s114_s30 = int_to_ptr.vmem [resolvable:$true] %s113_s30 }
   0xf   :  { %91 = vmatpush.msra.mxu1 %v78_v11  ;;  %v75_v17 = vld [vmem:[%s285_s2 + $0x40] sm:$0xff]  ;;  %v30_v18 = vld [vmem:[%s284_s1 + $0x28] sm:$0xff]  ;;  %v74_v19 = vld [vmem:[%s285_s2 + $0x38] sm:$0xff] }
  0x10   :  { %48 = vmatpush.msra.mxu0 %v33_v12  ;;  %v29_v20 = vld [vmem:[%s284_s1 + $0x20] sm:$0xff]  ;;  %v73_v21 = vld [vmem:[%s285_s2 + $0x30] sm:$0xff]  ;;  %v28_v22 = vld [vmem:[%s284_s1 + $0x18] sm:$0xff] }
  0x11   :  { %92 = vmatpush.msra.mxu1 %v77_v13  ;;  %v72_v23 = vld [vmem:[%s285_s2 + $0x28] sm:$0xff]  ;;  %v27_v24 = vld [vmem:[%s284_s1 + $0x10] sm:$0xff]  ;;  %v71_v25 = vld [vmem:[%s285_s2 + $0x20] sm:$0xff] }
  0x12   :  { %49 = vmatpush.msra.mxu0 %v32_v14  ;;  %v26_v26 = vld [vmem:[%s284_s1 + $0x8] sm:$0xff]  ;;  %v70_v27 = vld [vmem:[%s285_s2 + $0x18] sm:$0xff]  ;;  %v25_v28 = vld [vmem:[%s284_s1] sm:$0xff] }
  0x13   :  { %93 = vmatpush.msra.mxu1 %v76_v15  ;;  %v24_v29 = vld [vmem:[%s283_s0] sm:$0xff]  ;;  %v69_v30 = vld [vmem:[%s285_s2 + $0x10] sm:$0xff]  ;;  %v68_v31 = vld [vmem:[%s285_s2 + $0x8] sm:$0xff] }
  0x14   :  { %50 = vmatpush.msra.mxu0 %v31_v16  ;;  %v67_v32 = vld [vmem:[%s285_s2] sm:$0xff] }
  0x15   :  { %94 = vmatpush.msra.mxu1 %v75_v17  ;;  %v125_v34 = vld [vmem:[%s286_s3] ss:$0 sm:$0xff] }
  0x16   :  { %51 = vmatpush.msra.mxu0 %v30_v18 }
  0x17   :  { %95 = vmatpush.msra.mxu1 %v74_v19 }
  0x18   :  { %52 = vmatpush.msra.mxu0 %v29_v20 }
  0x19   :  { %96 = vmatpush.msra.mxu1 %v73_v21 }
  0x1a   :  { %53 = vmatpush.msra.mxu0 %v28_v22 }
  0x1b   :  { %97 = vmatpush.msra.mxu1 %v72_v23 }
  0x1c   :  { %54 = vmatpush.msra.mxu0 %v27_v24 }
  0x1d   :  { %98 = vmatpush.msra.mxu1 %v71_v25 }
  0x1e   :  { %55 = vmatpush.msra.mxu0 %v26_v26 }
  0x1f   :  { %99 = vmatpush.msra.mxu1 %v70_v27 }
  0x20   :  { %56 = vmatpush.msra.mxu0 %v25_v28 }
  0x21   :  { %57 = vmatmul.f32.vlgmr.msra.gmra.mxu0 %v24_v29  ;;  %100 = vmatpush.msra.mxu1 %v69_v30 }
  0x23   :  { %101 = vmatpush.msra.mxu1 %v68_v31 }
  0x25   :  { %102 = vmatpush.msra.mxu1 %v67_v32 }
  0x9e   :  { %v58_v33 = vpop.f32.mrf.mxu0 }
  0x9f   :  { %103 = vmatmul.f32.vlgmr.msra.gmra.mxu1 %v58_v33 }
 0x11c   :  { %v104_v35 = vpop.f32.mrf.mxu1 }
 0x11d   :  { %v105_v36 = vadd.f32 %v125_v34, %v104_v35 }
 0x11f   :  { %107 = vst [vmem:[#allocation3] sm:$0xff] %v105_v36 }
 0x120   :  { %118 = dma.vmem_to_hbm [thread:$0]  %s114_s30, 128, %s116_s7, [#allocation4]  }
 0x121   :  { %150 = dma.done.wait [#allocation4], 128  }
 0x122   :  { %151 = vsyncadd [#allocation4], 4294967168 }
 0x123   :  { %123 = vsyncpa [#allocation4], 1 }

// kernel: _graphsage_forward.6
= control target key start
LH: loop header
LB: loop body
LE: loop exit
PB: predicated region body
PF: predicated region fallthrough
CT: control target
= control target key end

     0   :  { %v745_v1 = vmov 0   ;;  %s1095_s1 = inlined_call_operand.vmem [shape: bf16[128,128], index: 1, kind: input, shape index: {}]   ;;  %s1096_s3 = inlined_call_operand.vmem [shape: f32[128,1], index: 3, kind: input, shape index: {}]   ;;  %s1097_s0 = inlined_call_operand.vmem [shape: bf16[128,128], index: 0, kind: input, shape index: {}]   ;;  %s1098_s5 = inlined_call_operand.vmem [shape: f32[128,128], index: 5, kind: input, shape index: {}]   ;;  %s1099_s4 = inlined_call_operand.vmem [shape: f32[128,128], index: 4, kind: input, shape index: {}]   ;;  %s1100_s2 = inlined_call_operand.vmem [shape: f32[128,128], index: 2, kind: input, shape index: {}]   ;;  %s1101_s6 = inlined_call_operand.vmem [shape: f32[1,128], index: 6, kind: input, shape index: {}]   ;;  %s1102_s7 = inlined_call_operand.vmem [shape: f32[128,128], index: 7, kind: output, shape index: {}]  }
   0x1   :  { %v699_v0 = vld [vmem:[%s1095_s1 + $0x38] sm:$0xff]  ;;  %741 = vset.pattern.permute.xlu0 %v745_v1  ;;  %v290_v2 = vld [vmem:[%s1096_s3] sm:$0xff]  ;;  %742 = vset.pattern.permute.xlu1 %v745_v1  ;;  %v698_v3 = vld [vmem:[%s1095_s1 + $0x30] sm:$0xff] }
   0x2   :  { %308 = vperm.xlu0 %741, %v290_v2   ;;  %743 = vset.pattern.permute.xlu2 %v745_v1  ;;  %v292_v4 = vld [vmem:[%s1096_s3 + $0x10] sm:$0xff]  ;;  %v697_v5 = vld [vmem:[%s1095_s1 + $0x28] sm:$0xff]  ;;  %v293_v7 = vld [vmem:[%s1096_s3 + $0x18] sm:$0xff] }
   0x3   :  { %190 = vmatpush.bf16.msra.mxu0 %v699_v0  ;;  %700 = vmatpush.bf16.msra.mxu3 %v699_v0  ;;  %v291_v6 = vld [vmem:[%s1096_s3 + $0x8] sm:$0xff]  ;;  %v696_v8 = vld [vmem:[%s1095_s1 + $0x20] sm:$0xff]  ;;  %v695_v9 = vld [vmem:[%s1095_s1 + $0x18] sm:$0xff] }
   0x4   :  { %318 = vperm.xlu1 %742, %v292_v4   ;;  %v296_v10 = vld [vmem:[%s1096_s3 + $0x30] sm:$0xff]  ;;  %v297_v11 = vld [vmem:[%s1096_s3 + $0x38] sm:$0xff]  ;;  %v294_v12 = vld [vmem:[%s1096_s3 + $0x20] sm:$0xff] }
   0x5   :  { %v694_v13 = vld [vmem:[%s1095_s1 + $0x10] sm:$0xff]  ;;  %328 = vperm.xlu2 %743, %v294_v12   ;;  %v693_v14 = vld [vmem:[%s1095_s1 + $0x8] sm:$0xff]  ;;  %v302_v15 = vld [vmem:[%s1096_s3 + $0x60] sm:$0xff] }
   0x6   :  { %v299_v16 = vld [vmem:[%s1096_s3 + $0x48] sm:$0xff]  ;;  %v692_v17 = vld [vmem:[%s1095_s1] sm:$0xff]  ;;  %v690_v19 = vld [vmem:[%s1097_s0 + $0x30] sm:$0xff] }
   0x7   :  { %191 = vmatpush.bf16.msra.mxu0 %v698_v3  ;;  %701 = vmatpush.bf16.msra.mxu3 %v698_v3  ;;  %v684_v18 = vld [vmem:[%s1097_s0] sm:$0xff]  ;;  %v300_v20 = vld [vmem:[%s1096_s3 + $0x50] sm:$0xff]  ;;  %v295_v22 = vld [vmem:[%s1096_s3 + $0x28] sm:$0xff] }
   0x8   :  { %v304_v21 = vld [vmem:[%s1096_s3 + $0x70] sm:$0xff]  ;;  %v305_v23 = vld [vmem:[%s1096_s3 + $0x78] sm:$0xff]  ;;  %v298_v24 = vld [vmem:[%s1096_s3 + $0x40] sm:$0xff] }
   0x9   :  { %v685_v25 = vld [vmem:[%s1097_s0 + $0x8] sm:$0xff]  ;;  %v691_v26 = vld [vmem:[%s1097_s0 + $0x38] sm:$0xff]  ;;  %v686_v28 = vld [vmem:[%s1097_s0 + $0x10] sm:$0xff] }
   0xa   :  { %313 = vperm.xlu0 %741, %v291_v6   ;;  %v303_v27 = vld [vmem:[%s1096_s3 + $0x68] sm:$0xff]  ;;  %v301_v29 = vld [vmem:[%s1096_s3 + $0x58] sm:$0xff]  ;;  %v448_v31 = vld [vmem:[%s1098_s5 + $0x70] sm:$0xff] }
   0xb   :  { %192 = vmatpush.bf16.msra.mxu0 %v697_v5  ;;  %702 = vmatpush.bf16.msra.mxu3 %v697_v5  ;;  %v449_v30 = vld [vmem:[%s1098_s5 + $0x78] sm:$0xff]  ;;  %v447_v32 = vld [vmem:[%s1098_s5 + $0x68] sm:$0xff]  ;;  %v446_v33 = vld [vmem:[%s1098_s5 + $0x60] sm:$0xff] }
   0xc   :  { %323 = vperm.xlu1 %742, %v293_v7   ;;  %450 = vmatpush.msra.mxu1 %v449_v30  ;;  %v445_v34 = vld [vmem:[%s1098_s5 + $0x58] sm:$0xff]  ;;  %v444_v36 = vld [vmem:[%s1098_s5 + $0x50] sm:$0xff]  ;;  %v443_v37 = vld [vmem:[%s1098_s5 + $0x48] sm:$0xff] }
   0xd   :  { %333 = vperm.xlu2 %743, %v295_v22   ;;  %v687_v35 = vld [vmem:[%s1097_s0 + $0x18] sm:$0xff]  ;;  %v442_v38 = vld [vmem:[%s1098_s5 + $0x40] sm:$0xff]  ;;  %v440_v40 = vld [vmem:[%s1098_s5 + $0x30] sm:$0xff] }
   0xe   :  { %451 = vmatpush.msra.mxu1 %v448_v31  ;;  %v441_v39 = vld [vmem:[%s1098_s5 + $0x38] sm:$0xff]  ;;  %v439_v41 = vld [vmem:[%s1098_s5 + $0x28] sm:$0xff]  ;;  %v438_v42 = vld [vmem:[%s1098_s5 + $0x20] sm:$0xff] }
   0xf   :  { %193 = vmatpush.bf16.msra.mxu0 %v696_v8  ;;  %703 = vmatpush.bf16.msra.mxu3 %v696_v8  ;;  %v417_v43 = vld [vmem:[%s1099_s4 + $0x78] sm:$0xff]  ;;  %v416_v44 = vld [vmem:[%s1099_s4 + $0x70] sm:$0xff]  ;;  %v688_v45 = vld [vmem:[%s1097_s0 + $0x20] sm:$0xff] }
  0x10   :  { %452 = vmatpush.msra.mxu1 %v447_v32  ;;  %v437_v46 = vld [vmem:[%s1098_s5 + $0x18] sm:$0xff]  ;;  %515 = vmatpush.msra.mxu2 %v417_v43  ;;  %v415_v47 = vld [vmem:[%s1099_s4 + $0x68] sm:$0xff]  ;;  %v436_v48 = vld [vmem:[%s1098_s5 + $0x10] sm:$0xff] }
  0x11   :  { %v435_v49 = vld [vmem:[%s1098_s5 + $0x8] sm:$0xff]  ;;  %v434_v50 = vld [vmem:[%s1098_s5] sm:$0xff]  ;;  %v413_v53 = vld [vmem:[%s1099_s4 + $0x58] sm:$0xff] }
  0x12   :  { %338 = vperm.xlu0 %741, %v296_v10   ;;  %453 = vmatpush.msra.mxu1 %v446_v33  ;;  %v414_v51 = vld [vmem:[%s1099_s4 + $0x60] sm:$0xff]  ;;  %v412_v54 = vld [vmem:[%s1099_s4 + $0x50] sm:$0xff]  ;;  %v411_v55 = vld [vmem:[%s1099_s4 + $0x48] sm:$0xff] }
  0x13   :  { %194 = vmatpush.bf16.msra.mxu0 %v695_v9  ;;  %704 = vmatpush.bf16.msra.mxu3 %v695_v9  ;;  %v430_v52 = vld [vmem:[%s1100_s2 + $0x60] sm:$0xff]  ;;  %v409_v57 = vld [vmem:[%s1099_s4 + $0x38] sm:$0xff]  ;;  %v431_v58 = vld [vmem:[%s1100_s2 + $0x68] sm:$0xff] }
  0x14   :  { %343 = vperm.xlu1 %742, %v297_v11   ;;  %454 = vmatpush.msra.mxu1 %v445_v34  ;;  %v410_v56 = vld [vmem:[%s1099_s4 + $0x40] sm:$0xff]  ;;  %v689_v59 = vld [vmem:[%s1097_s0 + $0x28] sm:$0xff]  ;;  %v408_v60 = vld [vmem:[%s1099_s4 + $0x30] sm:$0xff] }
  0x15   :  { %348 = vperm.xlu2 %743, %v298_v24   ;;  %516 = vmatpush.msra.mxu2 %v416_v44  ;;  %v407_v61 = vld [vmem:[%s1099_s4 + $0x28] sm:$0xff]  ;;  %v432_v62 = vld [vmem:[%s1100_s2 + $0x70] sm:$0xff]  ;;  %v406_v63 = vld [vmem:[%s1099_s4 + $0x20] sm:$0xff] }
  0x16   :  { %455 = vmatpush.msra.mxu1 %v444_v36  ;;  %v405_v0 = vld [vmem:[%s1099_s4 + $0x18] sm:$0xff]  ;;  %v404_v1 = vld [vmem:[%s1099_s4 + $0x10] sm:$0xff]  ;;  %v403_v2 = vld [vmem:[%s1099_s4 + $0x8] sm:$0xff] }
  0x17   :  { %195 = vmatpush.bf16.msra.mxu0 %v694_v13  ;;  %705 = vmatpush.bf16.msra.mxu3 %v694_v13  ;;  %v433_v3 = vld [vmem:[%s1100_s2 + $0x78] sm:$0xff]  ;;  %v402_v4 = vld [vmem:[%s1099_s4] sm:$0xff]  ;;  %v419_v9 = vld [vmem:[%s1100_s2 + $0x8] sm:$0xff] }
  0x18   :  { %456 = vmatpush.msra.mxu1 %v443_v37  ;;  %517 = vmatpush.msra.mxu2 %v415_v47  ;;  %v418_v6 = vld [vmem:[%s1100_s2] sm:$0xff]  ;;  %v420_v13 = vld [vmem:[%s1100_s2 + $0x10] sm:$0xff] }
  0x19   :  { %v422_v24 = vld [vmem:[%s1100_s2 + $0x20] sm:$0xff] }
  0x1a   :  { %368 = vperm.xlu0 %741, %v302_v15   ;;  %457 = vmatpush.msra.mxu1 %v442_v38 }
  0x1b   :  { %196 = vmatpush.bf16.msra.mxu0 %v693_v14  ;;  %706 = vmatpush.bf16.msra.mxu3 %v693_v14 }
  0x1c   :  { %353 = vperm.xlu1 %742, %v299_v16   ;;  %458 = vmatpush.msra.mxu1 %v441_v39  ;;  %v421_v16 = vld [vmem:[%s1100_s2 + $0x18] sm:$0xff] }
  0x1d   :  { %373 = vperm.xlu2 %743, %v303_v27   ;;  %518 = vmatpush.msra.mxu2 %v414_v51 }
  0x1e   :  { %459 = vmatpush.msra.mxu1 %v440_v40 }
  0x1f   :  { %197 = vmatpush.bf16.msra.mxu0 %v692_v17  ;;  %707 = vmatpush.bf16.msra.mxu3 %v692_v17 }
  0x20   :  { %460 = vmatpush.msra.mxu1 %v439_v41  ;;  %519 = vmatpush.msra.mxu2 %v413_v53 }
  0x22   :  { %198 = vmatmul.bf16.vlgmr.msra.gmra.mxu0 %v684_v18  ;;  %228 = vmatmul.bf16.vlgmr.msra.gmra.mxu3 %v690_v19 }
  0x23   :  { %358 = vperm.xlu0 %741, %v300_v20   ;;  %708 = vmatpush.msrb.mxu3 %v449_v30 }
  0x24   :  { %378 = vperm.xlu1 %742, %v304_v21   ;;  %461 = vmatpush.msra.mxu1 %v438_v42 }
  0x25   :  { %363 = vperm.xlu2 %743, %v301_v29   ;;  %709 = vmatpush.msrb.mxu3 %v448_v31  ;;  %v423_v31 = vld [vmem:[%s1100_s2 + $0x28] sm:$0xff] }
  0x26   :  { %462 = vmatpush.msra.mxu1 %v437_v46  ;;  %520 = vmatpush.msra.mxu2 %v412_v54 }
  0x27   :  { %710 = vmatpush.msrb.mxu3 %v447_v32 }
  0x28   :  { %463 = vmatpush.msra.mxu1 %v436_v48  ;;  %521 = vmatpush.msra.mxu2 %v411_v55 }
  0x29   :  { %711 = vmatpush.msrb.mxu3 %v446_v33 }
  0x2a   :  { %464 = vmatpush.msra.mxu1 %v435_v49  ;;  %522 = vmatpush.msra.mxu2 %v410_v56 }
  0x2b   :  { %383 = vperm.xlu0 %741, %v305_v23   ;;  %712 = vmatpush.msrb.mxu3 %v445_v34 }
  0x2c   :  { %465 = vmatpush.msra.mxu1 %v434_v50  ;;  %523 = vmatpush.msra.mxu2 %v409_v57 }
  0x2d   :  { %713 = vmatpush.msrb.mxu3 %v444_v36  ;;  %466 = vmatmul.f32.vlgmr.msra.gmra.mxu1 %v418_v6 }
  0x2e   :  { %524 = vmatpush.msra.mxu2 %v408_v60 }
  0x2f   :  { %714 = vmatpush.msrb.mxu3 %v443_v37 }
  0x30   :  { %525 = vmatpush.msra.mxu2 %v407_v61 }
  0x31   :  { %715 = vmatpush.msrb.mxu3 %v442_v38  ;;  %v424_v38 = vld [vmem:[%s1100_s2 + $0x30] sm:$0xff] }
  0x32   :  { %203 = vmatmul.bf16.gmra.mxu0 %v685_v25  ;;  %233 = vmatmul.bf16.gmra.mxu3 %v691_v26 }
  0x33   :  { %716 = vmatpush.msrb.mxu3 %v441_v39  ;;  %526 = vmatpush.msra.mxu2 %v406_v63 }
  0x35   :  { %717 = vmatpush.msrb.mxu3 %v440_v40  ;;  %527 = vmatpush.msra.mxu2 %v405_v0 }
  0x36   :  { %469 = vmatmul.f32.gmra.mxu1 %v419_v9 }
  0x37   :  { %718 = vmatpush.msrb.mxu3 %v439_v41  ;;  %528 = vmatpush.msra.mxu2 %v404_v1 }
  0x39   :  { %719 = vmatpush.msrb.mxu3 %v438_v42  ;;  %529 = vmatpush.msra.mxu2 %v403_v2 }
  0x3b   :  { %720 = vmatpush.msrb.mxu3 %v437_v46  ;;  %530 = vmatpush.msra.mxu2 %v402_v4 }
  0x3d   :  { %721 = vmatpush.msrb.mxu3 %v436_v48 }
  0x3e   :  { %472 = vmatmul.f32.gmra.mxu1 %v420_v13 }
  0x3f   :  { %722 = vmatpush.msrb.mxu3 %v435_v49 }
  0x41   :  { %723 = vmatpush.msrb.mxu3 %v434_v50  ;;  %v427_v50 = vld [vmem:[%s1100_s2 + $0x48] sm:$0xff] }
  0x42   :  { %208 = vmatmul.bf16.gmra.mxu0 %v686_v28  ;;  %502 = vmatmul.f32.vlgmr.msrb.gmra.mxu3 %v430_v52 }
  0x43   :  { %724 = vmatpush.msra.mxu3 %v417_v43 }
  0x45   :  { %725 = vmatpush.msra.mxu3 %v416_v44  ;;  %v425_v44 = vld [vmem:[%s1100_s2 + $0x38] sm:$0xff] }
  0x46   :  { %475 = vmatmul.f32.gmra.mxu1 %v421_v16 }
  0x47   :  { %726 = vmatpush.msra.mxu3 %v415_v47  ;;  %v426_v47 = vld [vmem:[%s1100_s2 + $0x40] sm:$0xff] }
  0x49   :  { %727 = vmatpush.msra.mxu3 %v414_v51 }
  0x4a   :  { %505 = vmatmul.f32.gmra.mxu3 %v431_v58 }
  0x4b   :  { %728 = vmatpush.msra.mxu3 %v413_v53  ;;  %v428_v53 = vld [vmem:[%s1100_s2 + $0x50] sm:$0xff] }
  0x4d   :  { %729 = vmatpush.msra.mxu3 %v412_v54 }
  0x4e   :  { %478 = vmatmul.f32.gmra.mxu1 %v422_v24 }
  0x4f   :  { %730 = vmatpush.msra.mxu3 %v411_v55  ;;  %v429_v55 = vld [vmem:[%s1100_s2 + $0x58] sm:$0xff] }
  0x51   :  { %731 = vmatpush.msra.mxu3 %v410_v56 }
  0x52   :  { %213 = vmatmul.bf16.gmra.mxu0 %v687_v35  ;;  %508 = vmatmul.f32.gmra.mxu3 %v432_v62 }
  0x53   :  { %732 = vmatpush.msra.mxu3 %v409_v57 }
  0x55   :  { %733 = vmatpush.msra.mxu3 %v408_v60 }
  0x56   :  { %481 = vmatmul.f32.gmra.mxu1 %v423_v31 }
  0x57   :  { %734 = vmatpush.msra.mxu3 %v407_v61 }
  0x59   :  { %735 = vmatpush.msra.mxu3 %v406_v63 }
  0x5a   :  { %511 = vmatmul.f32.gmra.mxu3 %v433_v3 }
  0x5b   :  { %736 = vmatpush.msra.mxu3 %v405_v0 }
  0x5d   :  { %737 = vmatpush.msra.mxu3 %v404_v1 }
  0x5e   :  { %484 = vmatmul.f32.gmra.mxu1 %v424_v38 }
  0x5f   :  { %738 = vmatpush.msra.mxu3 %v403_v2  ;;  %v329_v8 = vpop.permute.xlu2 %328 }
  0x61   :  { %739 = vmatpush.msra.mxu3 %v402_v4 }
  0x62   :  { %218 = vmatmul.bf16.gmra.mxu0 %v688_v45 }
  0x66   :  { %487 = vmatmul.f32.gmra.mxu1 %v425_v44 }
  0x67   :  { %v334_v12 = vpop.permute.xlu2 %333 }
  0x6e   :  { %490 = vmatmul.f32.gmra.mxu1 %v426_v47 }
  0x6f   :  { %v349_v19 = vpop.permute.xlu2 %348 }
  0x72   :  { %223 = vmatmul.bf16.gmra.mxu0 %v689_v59 }
  0x74   :  { %v309_v5 = vpop.permute.xlu0 %308 }
  0x76   :  { %v319_v7 = vpop.permute.xlu1 %318  ;;  %493 = vmatmul.f32.gmra.mxu1 %v427_v50 }
  0x77   :  { %v374_v27 = vpop.permute.xlu2 %373 }
  0x7c   :  { %v314_v10 = vpop.permute.xlu0 %313 }
  0x7e   :  { %v324_v11 = vpop.permute.xlu1 %323  ;;  %496 = vmatmul.f32.gmra.mxu1 %v428_v53 }
  0x7f   :  { %v364_v62 = vpop.permute.xlu2 %363 }
  0x84   :  { %v339_v14 = vpop.permute.xlu0 %338 }
  0x86   :  { %v344_v18 = vpop.permute.xlu1 %343  ;;  %499 = vmatmul.f32.gmra.mxu1 %v429_v55 }
  0x8c   :  { %v369_v20 = vpop.permute.xlu0 %368 }
  0x8e   :  { %v354_v26 = vpop.permute.xlu1 %353 }
  0x95   :  { %v359_v33 = vpop.permute.xlu0 %358 }
  0x96   :  { %v379_v34 = vpop.permute.xlu1 %378 }
  0x9d   :  { %v384_v40 = vpop.permute.xlu0 %383 }
  0x9f   :  { %v199_v15 = vpop.f32.mrf.mxu0 }
  0xa0   :  { %v386_v17 = vmul.f32 %v309_v5, %v199_v15 }
  0xa2   :  { %531 = vmatmul.f32.vlgmr.msra.gmra.mxu2 %v386_v17 }
  0xa5   :  { %v229_v21 = vpop.f32.mrf.mxu3 }
  0xa6   :  { %v398_v22 = vmul.f32 %v369_v20, %v229_v21 }
  0xa7   :  { %v201_v23 = vpop.f32.mrf.mxu0 }
  0xa8   :  { %v387_v25 = vmul.f32 %v314_v10, %v201_v23  ;;  %567 = vmatmul.f32.vlgmr.msra.gmra.mxu3 %v398_v22 }
  0xaa   :  { %534 = vmatmul.f32.gmra.mxu2 %v387_v25  ;;  %v467_v3 = vpop.f32.mrf.mxu1 }
  0xad   :  { %v231_v28 = vpop.f32.mrf.mxu3 }
  0xae   :  { %v399_v29 = vmul.f32 %v374_v27, %v231_v28 }
  0xaf   :  { %v204_v30 = vpop.f32.mrf.mxu0 }
  0xb0   :  { %v388_v32 = vmul.f32 %v319_v7, %v204_v30  ;;  %570 = vmatmul.f32.gmra.mxu3 %v399_v29 }
  0xb2   :  { %537 = vmatmul.f32.gmra.mxu2 %v388_v32 }
  0xb3   :  { %v470_v5 = vpop.f32.mrf.mxu1 }
  0xb5   :  { %v234_v35 = vpop.f32.mrf.mxu3 }
  0xb6   :  { %v400_v36 = vmul.f32 %v379_v34, %v234_v35 }
  0xb7   :  { %v206_v37 = vpop.f32.mrf.mxu0 }
  0xb8   :  { %v389_v39 = vmul.f32 %v324_v11, %v206_v37  ;;  %573 = vmatmul.f32.gmra.mxu3 %v400_v36 }
  0xba   :  { %540 = vmatmul.f32.gmra.mxu2 %v389_v39 }
  0xbb   :  { %v473_v7 = vpop.f32.mrf.mxu1 }
  0xbd   :  { %v236_v41 = vpop.f32.mrf.mxu3 }
  0xbe   :  { %v401_v42 = vmul.f32 %v384_v40, %v236_v41 }
  0xbf   :  { %v209_v43 = vpop.f32.mrf.mxu0 }
  0xc0   :  { %v390_v45 = vmul.f32 %v329_v8, %v209_v43  ;;  %576 = vmatmul.f32.gmra.mxu3 %v401_v42  ;;  %v1029_v8 = vld [vmem:[%s1101_s6] ss:$0 sm:$0xff] }
  0xc2   :  { %543 = vmatmul.f32.gmra.mxu2 %v390_v45 }
  0xc3   :  { %v476_v13 = vpop.f32.mrf.mxu1 }
  0xc5   :  { %v503_v1 = vpop.f32.mrf.mxu3 }
  0xc7   :  { %v211_v46 = vpop.f32.mrf.mxu0 }
  0xc8   :  { %v391_v48 = vmul.f32 %v334_v12, %v211_v46 }
  0xca   :  { %546 = vmatmul.f32.gmra.mxu2 %v391_v48 }
  0xcb   :  { %v479_v22 = vpop.f32.mrf.mxu1 }
  0xcd   :  { %v506_v2 = vpop.f32.mrf.mxu3 }
  0xcf   :  { %v214_v49 = vpop.f32.mrf.mxu0 }
  0xd0   :  { %v392_v51 = vmul.f32 %v339_v14, %v214_v49 }
  0xd2   :  { %549 = vmatmul.f32.gmra.mxu2 %v392_v51 }
  0xd3   :  { %v482_v31 = vpop.f32.mrf.mxu1 }
  0xd5   :  { %v509_v4 = vpop.f32.mrf.mxu3 }
  0xd7   :  { %v216_v52 = vpop.f32.mrf.mxu0 }
  0xd8   :  { %v393_v54 = vmul.f32 %v344_v18, %v216_v52 }
  0xda   :  { %552 = vmatmul.f32.gmra.mxu2 %v393_v54 }
  0xdb   :  { %v485_v39 = vpop.f32.mrf.mxu1 }
  0xdd   :  { %v512_v6 = vpop.f32.mrf.mxu3 }
  0xdf   :  { %v219_v56 = vpop.f32.mrf.mxu0 }
  0xe0   :  { %v394_v57 = vmul.f32 %v349_v19, %v219_v56 }
  0xe2   :  { %555 = vmatmul.f32.gmra.mxu2 %v394_v57 }
  0xe3   :  { %v488_v43 = vpop.f32.mrf.mxu1 }
  0xe7   :  { %v221_v58 = vpop.f32.mrf.mxu0 }
  0xe8   :  { %v395_v59 = vmul.f32 %v354_v26, %v221_v58 }
  0xea   :  { %558 = vmatmul.f32.gmra.mxu2 %v395_v59 }
  0xeb   :  { %v491_v48 = vpop.f32.mrf.mxu1 }
  0xef   :  { %v224_v60 = vpop.f32.mrf.mxu0 }
  0xf0   :  { %v396_v61 = vmul.f32 %v359_v33, %v224_v60 }
  0xf2   :  { %561 = vmatmul.f32.gmra.mxu2 %v396_v61 }
  0xf3   :  { %v494_v53 = vpop.f32.mrf.mxu1 }
  0xf7   :  { %v226_v63 = vpop.f32.mrf.mxu0 }
  0xf8   :  { %v397_v0 = vmul.f32 %v364_v62, %v226_v63 }
  0xfa   :  { %564 = vmatmul.f32.gmra.mxu2 %v397_v0 }
  0xfb   :  { %v497_v58 = vpop.f32.mrf.mxu1 }
 0x103   :  { %v500_v62 = vpop.f32.mrf.mxu1 }
 0x125   :  { %v532_v9 = vpop.f32.mrf.mxu2 }
 0x126   :  { %v533_v10 = vadd.f32 %v532_v9, %v467_v3 }
 0x128   :  { %v584_v11 = vadd.f32 %v1029_v8, %v533_v10 }
 0x12a   :  { %600 = vst [vmem:[%s1102_s7] sm:$0xff] %v584_v11 }
 0x12b   :  { %v568_v12 = vpop.f32.mrf.mxu3 }
 0x12c   :  { %v569_v14 = vadd.f32 %v568_v12, %v503_v1 }
 0x12d   :  { %v535_v15 = vpop.f32.mrf.mxu2 }
 0x12e   :  { %v596_v16 = vadd.f32 %v1029_v8, %v569_v14  ;;  %v536_v17 = vadd.f32 %v535_v15, %v470_v5 }
 0x130   :  { %612 = vst [vmem:[%s1102_s7 + $0x60] sm:$0xff] %v596_v16  ;;  %v585_v18 = vadd.f32 %v1029_v8, %v536_v17 }
 0x132   :  { %601 = vst [vmem:[%s1102_s7 + $0x8] sm:$0xff] %v585_v18 }
 0x133   :  { %v571_v19 = vpop.f32.mrf.mxu3 }
 0x134   :  { %v572_v20 = vadd.f32 %v571_v19, %v506_v2 }
 0x135   :  { %v538_v21 = vpop.f32.mrf.mxu2 }
 0x136   :  { %v597_v23 = vadd.f32 %v1029_v8, %v572_v20  ;;  %v539_v24 = vadd.f32 %v538_v21, %v473_v7 }
 0x138   :  { %613 = vst [vmem:[%s1102_s7 + $0x68] sm:$0xff] %v597_v23  ;;  %v586_v25 = vadd.f32 %v1029_v8, %v539_v24 }
 0x13a   :  { %602 = vst [vmem:[%s1102_s7 + $0x10] sm:$0xff] %v586_v25 }
 0x13b   :  { %v574_v26 = vpop.f32.mrf.mxu3 }
 0x13c   :  { %v575_v27 = vadd.f32 %v574_v26, %v509_v4 }
 0x13d   :  { %v541_v28 = vpop.f32.mrf.mxu2 }
 0x13e   :  { %v598_v29 = vadd.f32 %v1029_v8, %v575_v27  ;;  %v542_v30 = vadd.f32 %v541_v28, %v476_v13 }
 0x140   :  { %614 = vst [vmem:[%s1102_s7 + $0x70] sm:$0xff] %v598_v29  ;;  %v587_v32 = vadd.f32 %v1029_v8, %v542_v30 }
 0x142   :  { %603 = vst [vmem:[%s1102_s7 + $0x18] sm:$0xff] %v587_v32 }
 0x143   :  { %v577_v33 = vpop.f32.mrf.mxu3 }
 0x144   :  { %v578_v34 = vadd.f32 %v577_v33, %v512_v6 }
 0x145   :  { %v544_v35 = vpop.f32.mrf.mxu2 }
 0x146   :  { %v599_v36 = vadd.f32 %v1029_v8, %v578_v34  ;;  %v545_v37 = vadd.f32 %v544_v35, %v479_v22 }
 0x148   :  { %615 = vst [vmem:[%s1102_s7 + $0x78] sm:$0xff] %v599_v36  ;;  %v588_v38 = vadd.f32 %v1029_v8, %v545_v37 }
 0x14a   :  { %604 = vst [vmem:[%s1102_s7 + $0x20] sm:$0xff] %v588_v38 }
 0x14d   :  { %v547_v40 = vpop.f32.mrf.mxu2 }
 0x14e   :  { %v548_v41 = vadd.f32 %v547_v40, %v482_v31 }
 0x150   :  { %v589_v42 = vadd.f32 %v1029_v8, %v548_v41 }
 0x152   :  { %605 = vst [vmem:[%s1102_s7 + $0x28] sm:$0xff] %v589_v42 }
 0x155   :  { %v550_v44 = vpop.f32.mrf.mxu2 }
 0x156   :  { %v551_v45 = vadd.f32 %v550_v44, %v485_v39 }
 0x158   :  { %v590_v46 = vadd.f32 %v1029_v8, %v551_v45 }
 0x15a   :  { %606 = vst [vmem:[%s1102_s7 + $0x30] sm:$0xff] %v590_v46 }
 0x15d   :  { %v553_v47 = vpop.f32.mrf.mxu2 }
 0x15e   :  { %v554_v49 = vadd.f32 %v553_v47, %v488_v43 }
 0x160   :  { %v591_v50 = vadd.f32 %v1029_v8, %v554_v49 }
 0x162   :  { %607 = vst [vmem:[%s1102_s7 + $0x38] sm:$0xff] %v591_v50 }
 0x165   :  { %v556_v51 = vpop.f32.mrf.mxu2 }
 0x166   :  { %v557_v52 = vadd.f32 %v556_v51, %v491_v48 }
 0x168   :  { %v592_v54 = vadd.f32 %v1029_v8, %v557_v52 }
 0x16a   :  { %608 = vst [vmem:[%s1102_s7 + $0x40] sm:$0xff] %v592_v54 }
 0x16d   :  { %v559_v55 = vpop.f32.mrf.mxu2 }
 0x16e   :  { %v560_v56 = vadd.f32 %v559_v55, %v494_v53 }
 0x170   :  { %v593_v57 = vadd.f32 %v1029_v8, %v560_v56 }
 0x172   :  { %609 = vst [vmem:[%s1102_s7 + $0x48] sm:$0xff] %v593_v57 }
 0x175   :  { %v562_v59 = vpop.f32.mrf.mxu2 }
 0x176   :  { %v563_v60 = vadd.f32 %v562_v59, %v497_v58 }
 0x178   :  { %v594_v61 = vadd.f32 %v1029_v8, %v563_v60 }
 0x17a   :  { %610 = vst [vmem:[%s1102_s7 + $0x50] sm:$0xff] %v594_v61 }
 0x17d   :  { %v565_v63 = vpop.f32.mrf.mxu2 }
 0x17e   :  { %v566_v0 = vadd.f32 %v565_v63, %v500_v62 }
 0x180   :  { %v595_v1 = vadd.f32 %v1029_v8, %v566_v0 }
 0x182   :  { %611 = vst [vmem:[%s1102_s7 + $0x58] sm:$0xff] %v595_v1 }

// kernel: _graphsage_forward.4
= control target key start
LH: loop header
LB: loop body
LE: loop exit
PB: predicated region body
PF: predicated region fallthrough
CT: control target
= control target key end

     0   :  { %v846_v1 = vmov 0   ;;  %s1225_s1 = inlined_call_operand.vmem [shape: bf16[128,128], index: 1, kind: input, shape index: {}]   ;;  %s1226_s3 = inlined_call_operand.vmem [shape: f32[128,1], index: 3, kind: input, shape index: {}]   ;;  %s1227_s0 = inlined_call_operand.vmem [shape: bf16[128,128], index: 0, kind: input, shape index: {}]   ;;  %s1228_s5 = inlined_call_operand.vmem [shape: f32[128,128], index: 5, kind: input, shape index: {}]   ;;  %s1229_s4 = inlined_call_operand.vmem [shape: f32[128,128], index: 4, kind: input, shape index: {}]   ;;  %s1230_s2 = inlined_call_operand.vmem [shape: f32[128,128], index: 2, kind: input, shape index: {}]   ;;  %s1231_s6 = inlined_call_operand.vmem [shape: f32[1,128], index: 6, kind: input, shape index: {}]   ;;  %s1232_s7 = inlined_call_operand.vmem [shape: f32[128,128], index: 7, kind: output, shape index: {0}]   ;;  %s1233_s8 = inlined_call_operand.vmem [shape: bf16[128,128], index: 8, kind: output, shape index: {1}]  }
   0x1   :  { %v753_v0 = vld [vmem:[%s1225_s1 + $0x38] sm:$0xff]  ;;  %842 = vset.pattern.permute.xlu0 %v846_v1  ;;  %v292_v2 = vld [vmem:[%s1226_s3] sm:$0xff]  ;;  %843 = vset.pattern.permute.xlu1 %v846_v1  ;;  %v752_v3 = vld [vmem:[%s1225_s1 + $0x30] sm:$0xff] }
   0x2   :  { %310 = vperm.xlu0 %842, %v292_v2   ;;  %844 = vset.pattern.permute.xlu2 %v846_v1  ;;  %v294_v4 = vld [vmem:[%s1226_s3 + $0x10] sm:$0xff]  ;;  %v751_v5 = vld [vmem:[%s1225_s1 + $0x28] sm:$0xff]  ;;  %v295_v7 = vld [vmem:[%s1226_s3 + $0x18] sm:$0xff] }
   0x3   :  { %192 = vmatpush.bf16.msra.mxu0 %v753_v0  ;;  %801 = vmatpush.bf16.msra.mxu3 %v753_v0  ;;  %v293_v6 = vld [vmem:[%s1226_s3 + $0x8] sm:$0xff]  ;;  %v750_v8 = vld [vmem:[%s1225_s1 + $0x20] sm:$0xff]  ;;  %v749_v9 = vld [vmem:[%s1225_s1 + $0x18] sm:$0xff] }
   0x4   :  { %320 = vperm.xlu1 %843, %v294_v4   ;;  %v298_v10 = vld [vmem:[%s1226_s3 + $0x30] sm:$0xff]  ;;  %v299_v11 = vld [vmem:[%s1226_s3 + $0x38] sm:$0xff]  ;;  %v296_v12 = vld [vmem:[%s1226_s3 + $0x20] sm:$0xff] }
   0x5   :  { %v748_v13 = vld [vmem:[%s1225_s1 + $0x10] sm:$0xff]  ;;  %330 = vperm.xlu2 %844, %v296_v12   ;;  %v747_v14 = vld [vmem:[%s1225_s1 + $0x8] sm:$0xff]  ;;  %v304_v15 = vld [vmem:[%s1226_s3 + $0x60] sm:$0xff] }
   0x6   :  { %v301_v16 = vld [vmem:[%s1226_s3 + $0x48] sm:$0xff]  ;;  %v746_v17 = vld [vmem:[%s1225_s1] sm:$0xff]  ;;  %v744_v19 = vld [vmem:[%s1227_s0 + $0x30] sm:$0xff] }
   0x7   :  { %193 = vmatpush.bf16.msra.mxu0 %v752_v3  ;;  %802 = vmatpush.bf16.msra.mxu3 %v752_v3  ;;  %v738_v18 = vld [vmem:[%s1227_s0] sm:$0xff]  ;;  %v302_v20 = vld [vmem:[%s1226_s3 + $0x50] sm:$0xff]  ;;  %v297_v22 = vld [vmem:[%s1226_s3 + $0x28] sm:$0xff] }
   0x8   :  { %v306_v21 = vld [vmem:[%s1226_s3 + $0x70] sm:$0xff]  ;;  %v307_v23 = vld [vmem:[%s1226_s3 + $0x78] sm:$0xff]  ;;  %v300_v24 = vld [vmem:[%s1226_s3 + $0x40] sm:$0xff] }
   0x9   :  { %v739_v25 = vld [vmem:[%s1227_s0 + $0x8] sm:$0xff]  ;;  %v745_v26 = vld [vmem:[%s1227_s0 + $0x38] sm:$0xff]  ;;  %v740_v28 = vld [vmem:[%s1227_s0 + $0x10] sm:$0xff] }
   0xa   :  { %315 = vperm.xlu0 %842, %v293_v6   ;;  %v305_v27 = vld [vmem:[%s1226_s3 + $0x68] sm:$0xff]  ;;  %v303_v29 = vld [vmem:[%s1226_s3 + $0x58] sm:$0xff]  ;;  %v450_v31 = vld [vmem:[%s1228_s5 + $0x70] sm:$0xff] }
   0xb   :  { %194 = vmatpush.bf16.msra.mxu0 %v751_v5  ;;  %803 = vmatpush.bf16.msra.mxu3 %v751_v5  ;;  %v451_v30 = vld [vmem:[%s1228_s5 + $0x78] sm:$0xff]  ;;  %v449_v32 = vld [vmem:[%s1228_s5 + $0x68] sm:$0xff]  ;;  %v448_v33 = vld [vmem:[%s1228_s5 + $0x60] sm:$0xff] }
   0xc   :  { %325 = vperm.xlu1 %843, %v295_v7   ;;  %452 = vmatpush.msra.mxu1 %v451_v30  ;;  %v447_v34 = vld [vmem:[%s1228_s5 + $0x58] sm:$0xff]  ;;  %v446_v36 = vld [vmem:[%s1228_s5 + $0x50] sm:$0xff]  ;;  %v445_v37 = vld [vmem:[%s1228_s5 + $0x48] sm:$0xff] }
   0xd   :  { %335 = vperm.xlu2 %844, %v297_v22   ;;  %v741_v35 = vld [vmem:[%s1227_s0 + $0x18] sm:$0xff]  ;;  %v444_v38 = vld [vmem:[%s1228_s5 + $0x40] sm:$0xff]  ;;  %v442_v40 = vld [vmem:[%s1228_s5 + $0x30] sm:$0xff] }
   0xe   :  { %453 = vmatpush.msra.mxu1 %v450_v31  ;;  %v443_v39 = vld [vmem:[%s1228_s5 + $0x38] sm:$0xff]  ;;  %v441_v41 = vld [vmem:[%s1228_s5 + $0x28] sm:$0xff]  ;;  %v440_v42 = vld [vmem:[%s1228_s5 + $0x20] sm:$0xff] }
   0xf   :  { %195 = vmatpush.bf16.msra.mxu0 %v750_v8  ;;  %804 = vmatpush.bf16.msra.mxu3 %v750_v8  ;;  %v419_v43 = vld [vmem:[%s1229_s4 + $0x78] sm:$0xff]  ;;  %v418_v44 = vld [vmem:[%s1229_s4 + $0x70] sm:$0xff]  ;;  %v742_v45 = vld [vmem:[%s1227_s0 + $0x20] sm:$0xff] }
  0x10   :  { %454 = vmatpush.msra.mxu1 %v449_v32  ;;  %v439_v46 = vld [vmem:[%s1228_s5 + $0x18] sm:$0xff]  ;;  %517 = vmatpush.msra.mxu2 %v419_v43  ;;  %v417_v47 = vld [vmem:[%s1229_s4 + $0x68] sm:$0xff]  ;;  %v438_v48 = vld [vmem:[%s1228_s5 + $0x10] sm:$0xff] }
  0x11   :  { %v437_v49 = vld [vmem:[%s1228_s5 + $0x8] sm:$0xff]  ;;  %v436_v50 = vld [vmem:[%s1228_s5] sm:$0xff]  ;;  %v415_v53 = vld [vmem:[%s1229_s4 + $0x58] sm:$0xff] }
  0x12   :  { %340 = vperm.xlu0 %842, %v298_v10   ;;  %455 = vmatpush.msra.mxu1 %v448_v33  ;;  %v416_v51 = vld [vmem:[%s1229_s4 + $0x60] sm:$0xff]  ;;  %v414_v54 = vld [vmem:[%s1229_s4 + $0x50] sm:$0xff]  ;;  %v413_v55 = vld [vmem:[%s1229_s4 + $0x48] sm:$0xff] }
  0x13   :  { %196 = vmatpush.bf16.msra.mxu0 %v749_v9  ;;  %805 = vmatpush.bf16.msra.mxu3 %v749_v9  ;;  %v432_v52 = vld [vmem:[%s1230_s2 + $0x60] sm:$0xff]  ;;  %v411_v57 = vld [vmem:[%s1229_s4 + $0x38] sm:$0xff]  ;;  %v433_v58 = vld [vmem:[%s1230_s2 + $0x68] sm:$0xff] }
  0x14   :  { %345 = vperm.xlu1 %843, %v299_v11   ;;  %456 = vmatpush.msra.mxu1 %v447_v34  ;;  %v412_v56 = vld [vmem:[%s1229_s4 + $0x40] sm:$0xff]  ;;  %v743_v59 = vld [vmem:[%s1227_s0 + $0x28] sm:$0xff]  ;;  %v410_v60 = vld [vmem:[%s1229_s4 + $0x30] sm:$0xff] }
  0x15   :  { %350 = vperm.xlu2 %844, %v300_v24   ;;  %518 = vmatpush.msra.mxu2 %v418_v44  ;;  %v409_v61 = vld [vmem:[%s1229_s4 + $0x28] sm:$0xff]  ;;  %v434_v62 = vld [vmem:[%s1230_s2 + $0x70] sm:$0xff]  ;;  %v408_v63 = vld [vmem:[%s1229_s4 + $0x20] sm:$0xff] }
  0x16   :  { %457 = vmatpush.msra.mxu1 %v446_v36  ;;  %v407_v0 = vld [vmem:[%s1229_s4 + $0x18] sm:$0xff]  ;;  %v406_v1 = vld [vmem:[%s1229_s4 + $0x10] sm:$0xff]  ;;  %v405_v2 = vld [vmem:[%s1229_s4 + $0x8] sm:$0xff] }
  0x17   :  { %197 = vmatpush.bf16.msra.mxu0 %v748_v13  ;;  %806 = vmatpush.bf16.msra.mxu3 %v748_v13  ;;  %v435_v3 = vld [vmem:[%s1230_s2 + $0x78] sm:$0xff]  ;;  %v404_v4 = vld [vmem:[%s1229_s4] sm:$0xff]  ;;  %v421_v9 = vld [vmem:[%s1230_s2 + $0x8] sm:$0xff] }
  0x18   :  { %458 = vmatpush.msra.mxu1 %v445_v37  ;;  %519 = vmatpush.msra.mxu2 %v417_v47  ;;  %v420_v6 = vld [vmem:[%s1230_s2] sm:$0xff]  ;;  %v422_v13 = vld [vmem:[%s1230_s2 + $0x10] sm:$0xff] }
  0x19   :  { %v424_v24 = vld [vmem:[%s1230_s2 + $0x20] sm:$0xff] }
  0x1a   :  { %370 = vperm.xlu0 %842, %v304_v15   ;;  %459 = vmatpush.msra.mxu1 %v444_v38 }
  0x1b   :  { %198 = vmatpush.bf16.msra.mxu0 %v747_v14  ;;  %807 = vmatpush.bf16.msra.mxu3 %v747_v14 }
  0x1c   :  { %355 = vperm.xlu1 %843, %v301_v16   ;;  %460 = vmatpush.msra.mxu1 %v443_v39  ;;  %v423_v16 = vld [vmem:[%s1230_s2 + $0x18] sm:$0xff] }
  0x1d   :  { %375 = vperm.xlu2 %844, %v305_v27   ;;  %520 = vmatpush.msra.mxu2 %v416_v51 }
  0x1e   :  { %461 = vmatpush.msra.mxu1 %v442_v40 }
  0x1f   :  { %199 = vmatpush.bf16.msra.mxu0 %v746_v17  ;;  %808 = vmatpush.bf16.msra.mxu3 %v746_v17 }
  0x20   :  { %462 = vmatpush.msra.mxu1 %v441_v41  ;;  %521 = vmatpush.msra.mxu2 %v415_v53 }
  0x22   :  { %200 = vmatmul.bf16.vlgmr.msra.gmra.mxu0 %v738_v18  ;;  %230 = vmatmul.bf16.vlgmr.msra.gmra.mxu3 %v744_v19 }
  0x23   :  { %360 = vperm.xlu0 %842, %v302_v20   ;;  %809 = vmatpush.msrb.mxu3 %v451_v30 }
  0x24   :  { %380 = vperm.xlu1 %843, %v306_v21   ;;  %463 = vmatpush.msra.mxu1 %v440_v42 }
  0x25   :  { %365 = vperm.xlu2 %844, %v303_v29   ;;  %810 = vmatpush.msrb.mxu3 %v450_v31  ;;  %v425_v31 = vld [vmem:[%s1230_s2 + $0x28] sm:$0xff] }
  0x26   :  { %464 = vmatpush.msra.mxu1 %v439_v46  ;;  %522 = vmatpush.msra.mxu2 %v414_v54 }
  0x27   :  { %811 = vmatpush.msrb.mxu3 %v449_v32 }
  0x28   :  { %465 = vmatpush.msra.mxu1 %v438_v48  ;;  %523 = vmatpush.msra.mxu2 %v413_v55 }
  0x29   :  { %812 = vmatpush.msrb.mxu3 %v448_v33 }
  0x2a   :  { %466 = vmatpush.msra.mxu1 %v437_v49  ;;  %524 = vmatpush.msra.mxu2 %v412_v56 }
  0x2b   :  { %385 = vperm.xlu0 %842, %v307_v23   ;;  %813 = vmatpush.msrb.mxu3 %v447_v34 }
  0x2c   :  { %467 = vmatpush.msra.mxu1 %v436_v50  ;;  %525 = vmatpush.msra.mxu2 %v411_v57 }
  0x2d   :  { %814 = vmatpush.msrb.mxu3 %v446_v36  ;;  %468 = vmatmul.f32.vlgmr.msra.gmra.mxu1 %v420_v6 }
  0x2e   :  { %526 = vmatpush.msra.mxu2 %v410_v60 }
  0x2f   :  { %815 = vmatpush.msrb.mxu3 %v445_v37 }
  0x30   :  { %527 = vmatpush.msra.mxu2 %v409_v61 }
  0x31   :  { %816 = vmatpush.msrb.mxu3 %v444_v38  ;;  %v426_v38 = vld [vmem:[%s1230_s2 + $0x30] sm:$0xff] }
  0x32   :  { %205 = vmatmul.bf16.gmra.mxu0 %v739_v25  ;;  %235 = vmatmul.bf16.gmra.mxu3 %v745_v26 }
  0x33   :  { %817 = vmatpush.msrb.mxu3 %v443_v39  ;;  %528 = vmatpush.msra.mxu2 %v408_v63 }
  0x35   :  { %818 = vmatpush.msrb.mxu3 %v442_v40  ;;  %529 = vmatpush.msra.mxu2 %v407_v0 }
  0x36   :  { %471 = vmatmul.f32.gmra.mxu1 %v421_v9 }
  0x37   :  { %819 = vmatpush.msrb.mxu3 %v441_v41  ;;  %530 = vmatpush.msra.mxu2 %v406_v1 }
  0x39   :  { %820 = vmatpush.msrb.mxu3 %v440_v42  ;;  %531 = vmatpush.msra.mxu2 %v405_v2 }
  0x3b   :  { %821 = vmatpush.msrb.mxu3 %v439_v46  ;;  %532 = vmatpush.msra.mxu2 %v404_v4 }
  0x3d   :  { %822 = vmatpush.msrb.mxu3 %v438_v48 }
  0x3e   :  { %474 = vmatmul.f32.gmra.mxu1 %v422_v13 }
  0x3f   :  { %823 = vmatpush.msrb.mxu3 %v437_v49 }
  0x41   :  { %824 = vmatpush.msrb.mxu3 %v436_v50  ;;  %v429_v50 = vld [vmem:[%s1230_s2 + $0x48] sm:$0xff] }
  0x42   :  { %210 = vmatmul.bf16.gmra.mxu0 %v740_v28  ;;  %504 = vmatmul.f32.vlgmr.msrb.gmra.mxu3 %v432_v52 }
  0x43   :  { %825 = vmatpush.msra.mxu3 %v419_v43 }
  0x45   :  { %826 = vmatpush.msra.mxu3 %v418_v44  ;;  %v427_v44 = vld [vmem:[%s1230_s2 + $0x38] sm:$0xff] }
  0x46   :  { %477 = vmatmul.f32.gmra.mxu1 %v423_v16 }
  0x47   :  { %827 = vmatpush.msra.mxu3 %v417_v47  ;;  %v428_v47 = vld [vmem:[%s1230_s2 + $0x40] sm:$0xff] }
  0x49   :  { %828 = vmatpush.msra.mxu3 %v416_v51 }
  0x4a   :  { %507 = vmatmul.f32.gmra.mxu3 %v433_v58 }
  0x4b   :  { %829 = vmatpush.msra.mxu3 %v415_v53  ;;  %v430_v53 = vld [vmem:[%s1230_s2 + $0x50] sm:$0xff] }
  0x4d   :  { %830 = vmatpush.msra.mxu3 %v414_v54 }
  0x4e   :  { %480 = vmatmul.f32.gmra.mxu1 %v424_v24 }
  0x4f   :  { %831 = vmatpush.msra.mxu3 %v413_v55  ;;  %v431_v55 = vld [vmem:[%s1230_s2 + $0x58] sm:$0xff] }
  0x51   :  { %832 = vmatpush.msra.mxu3 %v412_v56 }
  0x52   :  { %215 = vmatmul.bf16.gmra.mxu0 %v741_v35  ;;  %510 = vmatmul.f32.gmra.mxu3 %v434_v62 }
  0x53   :  { %833 = vmatpush.msra.mxu3 %v411_v57 }
  0x55   :  { %834 = vmatpush.msra.mxu3 %v410_v60 }
  0x56   :  { %483 = vmatmul.f32.gmra.mxu1 %v425_v31 }
  0x57   :  { %835 = vmatpush.msra.mxu3 %v409_v61 }
  0x59   :  { %836 = vmatpush.msra.mxu3 %v408_v63 }
  0x5a   :  { %513 = vmatmul.f32.gmra.mxu3 %v435_v3 }
  0x5b   :  { %837 = vmatpush.msra.mxu3 %v407_v0 }
  0x5d   :  { %838 = vmatpush.msra.mxu3 %v406_v1 }
  0x5e   :  { %486 = vmatmul.f32.gmra.mxu1 %v426_v38 }
  0x5f   :  { %839 = vmatpush.msra.mxu3 %v405_v2  ;;  %v331_v8 = vpop.permute.xlu2 %330 }
  0x61   :  { %840 = vmatpush.msra.mxu3 %v404_v4 }
  0x62   :  { %220 = vmatmul.bf16.gmra.mxu0 %v742_v45 }
  0x66   :  { %489 = vmatmul.f32.gmra.mxu1 %v427_v44 }
  0x67   :  { %v336_v12 = vpop.permute.xlu2 %335 }
  0x6e   :  { %492 = vmatmul.f32.gmra.mxu1 %v428_v47 }
  0x6f   :  { %v351_v19 = vpop.permute.xlu2 %350 }
  0x72   :  { %225 = vmatmul.bf16.gmra.mxu0 %v743_v59 }
  0x74   :  { %v311_v5 = vpop.permute.xlu0 %310 }
  0x76   :  { %v321_v7 = vpop.permute.xlu1 %320  ;;  %495 = vmatmul.f32.gmra.mxu1 %v429_v50 }
  0x77   :  { %v376_v27 = vpop.permute.xlu2 %375 }
  0x7c   :  { %v316_v10 = vpop.permute.xlu0 %315 }
  0x7e   :  { %v326_v11 = vpop.permute.xlu1 %325  ;;  %498 = vmatmul.f32.gmra.mxu1 %v430_v53 }
  0x7f   :  { %v366_v62 = vpop.permute.xlu2 %365 }
  0x84   :  { %v341_v14 = vpop.permute.xlu0 %340 }
  0x86   :  { %v346_v18 = vpop.permute.xlu1 %345  ;;  %501 = vmatmul.f32.gmra.mxu1 %v431_v55 }
  0x8c   :  { %v371_v20 = vpop.permute.xlu0 %370 }
  0x8e   :  { %v356_v26 = vpop.permute.xlu1 %355 }
  0x95   :  { %v361_v33 = vpop.permute.xlu0 %360 }
  0x96   :  { %v381_v34 = vpop.permute.xlu1 %380 }
  0x9d   :  { %v386_v40 = vpop.permute.xlu0 %385 }
  0x9f   :  { %v201_v15 = vpop.f32.mrf.mxu0 }
  0xa0   :  { %v388_v17 = vmul.f32 %v311_v5, %v201_v15 }
  0xa2   :  { %533 = vmatmul.f32.vlgmr.msra.gmra.mxu2 %v388_v17 }
  0xa5   :  { %v231_v21 = vpop.f32.mrf.mxu3 }
  0xa6   :  { %v400_v22 = vmul.f32 %v371_v20, %v231_v21 }
  0xa7   :  { %v203_v23 = vpop.f32.mrf.mxu0 }
  0xa8   :  { %v389_v25 = vmul.f32 %v316_v10, %v203_v23  ;;  %569 = vmatmul.f32.vlgmr.msra.gmra.mxu3 %v400_v22 }
  0xaa   :  { %536 = vmatmul.f32.gmra.mxu2 %v389_v25  ;;  %v469_v3 = vpop.f32.mrf.mxu1 }
  0xad   :  { %v233_v28 = vpop.f32.mrf.mxu3 }
  0xae   :  { %v401_v29 = vmul.f32 %v376_v27, %v233_v28 }
  0xaf   :  { %v206_v30 = vpop.f32.mrf.mxu0 }
  0xb0   :  { %v390_v32 = vmul.f32 %v321_v7, %v206_v30  ;;  %572 = vmatmul.f32.gmra.mxu3 %v401_v29 }
  0xb2   :  { %539 = vmatmul.f32.gmra.mxu2 %v390_v32 }
  0xb3   :  { %v472_v5 = vpop.f32.mrf.mxu1 }
  0xb5   :  { %v236_v35 = vpop.f32.mrf.mxu3 }
  0xb6   :  { %v402_v36 = vmul.f32 %v381_v34, %v236_v35 }
  0xb7   :  { %v208_v37 = vpop.f32.mrf.mxu0 }
  0xb8   :  { %v391_v39 = vmul.f32 %v326_v11, %v208_v37  ;;  %575 = vmatmul.f32.gmra.mxu3 %v402_v36 }
  0xba   :  { %542 = vmatmul.f32.gmra.mxu2 %v391_v39 }
  0xbb   :  { %v475_v7 = vpop.f32.mrf.mxu1 }
  0xbd   :  { %v238_v41 = vpop.f32.mrf.mxu3 }
  0xbe   :  { %v403_v42 = vmul.f32 %v386_v40, %v238_v41 }
  0xbf   :  { %v211_v43 = vpop.f32.mrf.mxu0 }
  0xc0   :  { %v392_v45 = vmul.f32 %v331_v8, %v211_v43  ;;  %578 = vmatmul.f32.gmra.mxu3 %v403_v42  ;;  %v1135_v8 = vld [vmem:[%s1231_s6] ss:$0 sm:$0xff] }
  0xc2   :  { %545 = vmatmul.f32.gmra.mxu2 %v392_v45 }
  0xc5   :  { %v505_v1 = vpop.f32.mrf.mxu3 }
  0xc7   :  { %v213_v46 = vpop.f32.mrf.mxu0 }
  0xc8   :  { %v393_v48 = vmul.f32 %v336_v12, %v213_v46 }
  0xca   :  { %548 = vmatmul.f32.gmra.mxu2 %v393_v48 }
  0xcd   :  { %v508_v2 = vpop.f32.mrf.mxu3 }
  0xcf   :  { %v216_v49 = vpop.f32.mrf.mxu0 }
  0xd0   :  { %v394_v51 = vmul.f32 %v341_v14, %v216_v49  ;;  %v478_v14 = vpop.f32.mrf.mxu1 }
  0xd2   :  { %551 = vmatmul.f32.gmra.mxu2 %v394_v51 }
  0xd5   :  { %v511_v4 = vpop.f32.mrf.mxu3 }
  0xd7   :  { %v218_v52 = vpop.f32.mrf.mxu0 }
  0xd8   :  { %v395_v54 = vmul.f32 %v346_v18, %v218_v52 }
  0xda   :  { %554 = vmatmul.f32.gmra.mxu2 %v395_v54 }
  0xdd   :  { %v514_v6 = vpop.f32.mrf.mxu3 }
  0xdf   :  { %v221_v56 = vpop.f32.mrf.mxu0 }
  0xe0   :  { %v396_v57 = vmul.f32 %v351_v19, %v221_v56 }
  0xe2   :  { %557 = vmatmul.f32.gmra.mxu2 %v396_v57 }
  0xe7   :  { %v223_v58 = vpop.f32.mrf.mxu0 }
  0xe8   :  { %v397_v59 = vmul.f32 %v356_v26, %v223_v58  ;;  %v481_v26 = vpop.f32.mrf.mxu1 }
  0xea   :  { %560 = vmatmul.f32.gmra.mxu2 %v397_v59 }
  0xef   :  { %v226_v60 = vpop.f32.mrf.mxu0 }
  0xf0   :  { %v398_v61 = vmul.f32 %v361_v33, %v226_v60  ;;  %v484_v38 = vpop.f32.mrf.mxu1 }
  0xf2   :  { %563 = vmatmul.f32.gmra.mxu2 %v398_v61 }
  0xf7   :  { %v228_v63 = vpop.f32.mrf.mxu0 }
  0xf8   :  { %v399_v0 = vmul.f32 %v366_v62, %v228_v63  ;;  %v487_v50 = vpop.f32.mrf.mxu1 }
  0xfa   :  { %566 = vmatmul.f32.gmra.mxu2 %v399_v0 }
 0x100   :  { %v490_v57 = vpop.f32.mrf.mxu1 }
 0x108   :  { %v493_v0 = vpop.f32.mrf.mxu1 }
 0x125   :  { %v534_v9 = vpop.f32.mrf.mxu2 }
 0x126   :  { %v535_v10 = vadd.f32 %v534_v9, %v469_v3 }
 0x128   :  { %v586_v11 = vadd.f32 %v1135_v8, %v535_v10 }
 0x12a   :  { %v602_v12 = vmax.f32 %v586_v11, 0.0 }
 0x12b   :  { %v570_v13 = vpop.f32.mrf.mxu3 }
 0x12c   :  { %618 = vst [vmem:[%s1232_s7] sm:$0xff] %v602_v12  ;;  %v571_v15 = vadd.f32 %v570_v13, %v505_v1 }
 0x12d   :  { %v537_v16 = vpop.f32.mrf.mxu2 }
 0x12e   :  { %v598_v17 = vadd.f32 %v1135_v8, %v571_v15  ;;  %v538_v18 = vadd.f32 %v537_v16, %v472_v5 }
 0x130   :  { %v614_v19 = vmax.f32 %v598_v17, 0.0  ;;  %v587_v20 = vadd.f32 %v1135_v8, %v538_v18 }
 0x132   :  { %630 = vst [vmem:[%s1232_s7 + $0x60] sm:$0xff] %v614_v19  ;;  %v603_v21 = vmax.f32 %v587_v20, 0.0 }
 0x133   :  { %v573_v22 = vpop.f32.mrf.mxu3 }
 0x134   :  { %619 = vst [vmem:[%s1232_s7 + $0x8] sm:$0xff] %v603_v21  ;;  %v757_v23 = vpack.c.bf16 %v603_v21, %v602_v12  ;;  %v574_v24 = vadd.f32 %v573_v22, %v508_v2 }
 0x135   :  { %v540_v25 = vpop.f32.mrf.mxu2 }
 0x136   :  { %758 = vst [vmem:[%s1233_s8] sm:$0xff] %v757_v23   ;;  %v599_v27 = vadd.f32 %v1135_v8, %v574_v24  ;;  %v541_v28 = vadd.f32 %v540_v25, %v475_v7  ;;  %v496_v7 = vpop.f32.mrf.mxu1 }
 0x138   :  { %v615_v29 = vmax.f32 %v599_v27, 0.0  ;;  %v588_v30 = vadd.f32 %v1135_v8, %v541_v28 }
 0x13a   :  { %631 = vst [vmem:[%s1232_s7 + $0x68] sm:$0xff] %v615_v29  ;;  %v787_v31 = vpack.c.bf16 %v615_v29, %v614_v19  ;;  %v604_v32 = vmax.f32 %v588_v30, 0.0 }
 0x13b   :  { %v576_v33 = vpop.f32.mrf.mxu3 }
 0x13c   :  { %799 = vst [vmem:[%s1233_s8 + $0x30] sm:$0xff] %v787_v31   ;;  %v577_v34 = vadd.f32 %v576_v33, %v511_v4 }
 0x13d   :  { %620 = vst [vmem:[%s1232_s7 + $0x10] sm:$0xff] %v604_v32  ;;  %v543_v35 = vpop.f32.mrf.mxu2 }
 0x13e   :  { %v600_v36 = vadd.f32 %v1135_v8, %v577_v34  ;;  %v544_v37 = vadd.f32 %v543_v35, %v478_v14  ;;  %v499_v14 = vpop.f32.mrf.mxu1 }
 0x140   :  { %v616_v39 = vmax.f32 %v600_v36, 0.0  ;;  %v589_v40 = vadd.f32 %v1135_v8, %v544_v37 }
 0x142   :  { %632 = vst [vmem:[%s1232_s7 + $0x70] sm:$0xff] %v616_v39  ;;  %v605_v41 = vmax.f32 %v589_v40, 0.0 }
 0x143   :  { %v579_v42 = vpop.f32.mrf.mxu3 }
 0x144   :  { %621 = vst [vmem:[%s1232_s7 + $0x18] sm:$0xff] %v605_v41  ;;  %v762_v43 = vpack.c.bf16 %v605_v41, %v604_v32  ;;  %v580_v44 = vadd.f32 %v579_v42, %v514_v6 }
 0x145   :  { %v546_v45 = vpop.f32.mrf.mxu2 }
 0x146   :  { %794 = vst [vmem:[%s1233_s8 + $0x8] sm:$0xff] %v762_v43   ;;  %v601_v46 = vadd.f32 %v1135_v8, %v580_v44  ;;  %v547_v47 = vadd.f32 %v546_v45, %v481_v26  ;;  %v502_v21 = vpop.f32.mrf.mxu1 }
 0x148   :  { %v617_v48 = vmax.f32 %v601_v46, 0.0  ;;  %v590_v49 = vadd.f32 %v1135_v8, %v547_v47 }
 0x14a   :  { %633 = vst [vmem:[%s1232_s7 + $0x78] sm:$0xff] %v617_v48  ;;  %v792_v51 = vpack.c.bf16 %v617_v48, %v616_v39  ;;  %v606_v52 = vmax.f32 %v590_v49, 0.0 }
 0x14c   :  { %800 = vst [vmem:[%s1233_s8 + $0x38] sm:$0xff] %v792_v51  }
 0x14d   :  { %622 = vst [vmem:[%s1232_s7 + $0x20] sm:$0xff] %v606_v52  ;;  %v549_v53 = vpop.f32.mrf.mxu2 }
 0x14e   :  { %v550_v54 = vadd.f32 %v549_v53, %v484_v38 }
 0x150   :  { %v591_v55 = vadd.f32 %v1135_v8, %v550_v54 }
 0x152   :  { %v607_v56 = vmax.f32 %v591_v55, 0.0 }
 0x154   :  { %623 = vst [vmem:[%s1232_s7 + $0x28] sm:$0xff] %v607_v56  ;;  %v767_v58 = vpack.c.bf16 %v607_v56, %v606_v52 }
 0x155   :  { %v552_v59 = vpop.f32.mrf.mxu2 }
 0x156   :  { %795 = vst [vmem:[%s1233_s8 + $0x10] sm:$0xff] %v767_v58   ;;  %v553_v60 = vadd.f32 %v552_v59, %v487_v50 }
 0x158   :  { %v592_v61 = vadd.f32 %v1135_v8, %v553_v60 }
 0x15a   :  { %v608_v62 = vmax.f32 %v592_v61, 0.0 }
 0x15c   :  { %624 = vst [vmem:[%s1232_s7 + $0x30] sm:$0xff] %v608_v62 }
 0x15d   :  { %v555_v63 = vpop.f32.mrf.mxu2 }
 0x15e   :  { %v556_v1 = vadd.f32 %v555_v63, %v490_v57 }
 0x160   :  { %v593_v2 = vadd.f32 %v1135_v8, %v556_v1 }
 0x162   :  { %v609_v3 = vmax.f32 %v593_v2, 0.0 }
 0x164   :  { %625 = vst [vmem:[%s1232_s7 + $0x38] sm:$0xff] %v609_v3  ;;  %v772_v4 = vpack.c.bf16 %v609_v3, %v608_v62 }
 0x165   :  { %v558_v5 = vpop.f32.mrf.mxu2 }
 0x166   :  { %796 = vst [vmem:[%s1233_s8 + $0x18] sm:$0xff] %v772_v4   ;;  %v559_v6 = vadd.f32 %v558_v5, %v493_v0 }
 0x168   :  { %v594_v9 = vadd.f32 %v1135_v8, %v559_v6 }
 0x16a   :  { %v610_v10 = vmax.f32 %v594_v9, 0.0 }
 0x16c   :  { %626 = vst [vmem:[%s1232_s7 + $0x40] sm:$0xff] %v610_v10 }
 0x16d   :  { %v561_v11 = vpop.f32.mrf.mxu2 }
 0x16e   :  { %v562_v12 = vadd.f32 %v561_v11, %v496_v7 }
 0x170   :  { %v595_v13 = vadd.f32 %v1135_v8, %v562_v12 }
 0x172   :  { %v611_v15 = vmax.f32 %v595_v13, 0.0 }
 0x174   :  { %627 = vst [vmem:[%s1232_s7 + $0x48] sm:$0xff] %v611_v15  ;;  %v777_v16 = vpack.c.bf16 %v611_v15, %v610_v10 }
 0x175   :  { %v564_v17 = vpop.f32.mrf.mxu2 }
 0x176   :  { %797 = vst [vmem:[%s1233_s8 + $0x20] sm:$0xff] %v777_v16   ;;  %v565_v18 = vadd.f32 %v564_v17, %v499_v14 }
 0x178   :  { %v596_v19 = vadd.f32 %v1135_v8, %v565_v18 }
 0x17a   :  { %v612_v20 = vmax.f32 %v596_v19, 0.0 }
 0x17c   :  { %628 = vst [vmem:[%s1232_s7 + $0x50] sm:$0xff] %v612_v20 }
 0x17d   :  { %v567_v22 = vpop.f32.mrf.mxu2 }
 0x17e   :  { %v568_v23 = vadd.f32 %v567_v22, %v502_v21 }
 0x180   :  { %v597_v24 = vadd.f32 %v1135_v8, %v568_v23 }
 0x182   :  { %v613_v25 = vmax.f32 %v597_v24, 0.0 }
 0x184   :  { %629 = vst [vmem:[%s1232_s7 + $0x58] sm:$0xff] %v613_v25  ;;  %v782_v26 = vpack.c.bf16 %v613_v25, %v612_v20 }
 0x186   :  { %798 = vst [vmem:[%s1233_s8 + $0x28] sm:$0xff] %v782_v26  }

</bundles_post_ra>
